<compile_context>
chip_gen: v7x
topology: tpu7x:2x2x1
jax: 0.10.0
libtpu: 0.0.40
codegen_flags: <defaults>
</compile_context>

<pallas_src>
import functools
import math

import jax
import jax.numpy as jnp
from jax.experimental import pallas as pl
from jax.experimental.pallas import tpu as pltpu  # noqa: F401  (kept for TPU-specific tuning hooks)


CFG = dict(
    vocab_size=100,
    max_position=16,
    type_vocab=2,
    hidden=32,
    num_heads=4,
    num_layers=2,
    intermediate=64,
    n_classes=3,
)

LOGIT_PAD = 128   # lane-dense classifier output width (sliced to n_classes outside)


# ----------------------------- Fused Pallas kernel ---------------------------

def _bert_fused_kernel(
    x_ref, mask_ref, emb_g_ref, emb_b_ref,
    wqkv_ref, bqkv_ref, wo_ref, bo_ref, ln1g_ref, ln1b_ref,
    wi_ref, bi_ref, wo2_ref, bo2_ref, ln2g_ref, ln2b_ref,
    poolw_ref, poolb_ref, clsw_ref, clsb_ref,
    logits_ref,
    *, batch, seq, num_layers, num_heads, head_dim, eps):
  """Whole batch in one step: [B*S, H] tokens -> [B, LOGIT_PAD] logits."""
  B, S = batch, seq
  H = x_ref.shape[-1]
  scale = 1.0 / math.sqrt(head_dim)

  def mm(x, w):
    # bf16 operands on the MXU, f32 accumulation.
    return jnp.dot(x.astype(jnp.bfloat16), w, preferred_element_type=jnp.float32)

  def layernorm(x, g, b):
    mean = jnp.mean(x, axis=-1, keepdims=True)
    xc = x - mean
    var = jnp.mean(xc * xc, axis=-1, keepdims=True)
    return (xc * jax.lax.rsqrt(var + eps)) * g + b

  def gelu(y):
    # tanh-approx GELU (EUP tanh slot); ~1e-3 off PyTorch's exact-erf GELU.
    c = math.sqrt(2.0 / math.pi)
    return 0.5 * y * (1.0 + jnp.tanh(c * (y + 0.044715 * y * y * y)))

  mask_bias = mask_ref[...]                                     # (B, 1, S) additive key bias
  x = layernorm(x_ref[...], emb_g_ref[...], emb_b_ref[...])     # (B*S, H) f32

  for l in range(num_layers):                                   # static unroll (L small)
    # Fused QKV projection on the full token slab: one [B*S,H]x[H,3H] matmul.
    qkv = mm(x, wqkv_ref[l]) + bqkv_ref[l]                      # (B*S, 3H) f32
    # 1/sqrt(Dh) folded into Q once; attention operands cast to bf16 (f32 acc).
    q = (qkv[:, 0 * H:1 * H] * scale).astype(jnp.bfloat16).reshape(B, S, H)
    k = qkv[:, 1 * H:2 * H].astype(jnp.bfloat16).reshape(B, S, H)
    v = qkv[:, 2 * H:3 * H].astype(jnp.bfloat16).reshape(B, S, H)

    # Attention, batched over B inside each einsum; heads statically unrolled
    # as lane-column slices (head h lives in columns [h*Dh, (h+1)*Dh)).
    # Per-head context stays in vregs; no VMEM scratch, no masked column stores.
    # TODO(synk): a single einsum over a fused (B*heads) batch dim would cut
    # MXU pushes further, but needs a (B,S,nH,Dh)->(B,nH,S,Dh) transpose that
    # is fragile to lower at these tiny non-native shapes.
    ctx_parts = []
    for h in range(num_heads):
      c0, c1 = h * head_dim, (h + 1) * head_dim
      s = jnp.einsum('bqd,bkd->bqk', q[:, :, c0:c1], k[:, :, c0:c1],
                     preferred_element_type=jnp.float32)        # (B, S, S)
      s = s + mask_bias                                         # mask padded key positions
      s = s - jnp.max(s, axis=-1, keepdims=True)
      p = jnp.exp(s)
      p = p * pl.reciprocal(jnp.sum(p, axis=-1, keepdims=True), approx=True)
      ctx_parts.append(
          jnp.einsum('bqk,bkd->bqd', p.astype(jnp.bfloat16), v[:, :, c0:c1],
                     preferred_element_type=jnp.float32))       # (B, S, Dh)
    ctx = jnp.concatenate(ctx_parts, axis=-1).reshape(B * S, H)  # merged heads, in vregs

    attn_out = mm(ctx, wo_ref[l]) + bo_ref[l]
    x = layernorm(attn_out + x, ln1g_ref[l], ln1b_ref[l])

    inter = gelu(mm(x, wi_ref[l]) + bi_ref[l])
    ffn_out = mm(inter, wo2_ref[l]) + bo2_ref[l]
    x = layernorm(ffn_out + x, ln2g_ref[l], ln2b_ref[l])

  # Pooler (tanh(Linear) on [CLS]) + classifier head, batched over all B CLS
  # rows; Dropout(p=0.3) is identity at inference.  Output store is lane-dense
  # (LOGIT_PAD = 128 columns), sliced to n_classes in the wrapper.
  cls = x.reshape(B, S, H)[:, 0, :]                             # (B, H)
  pooled = jnp.tanh(mm(cls, poolw_ref[...]) + poolb_ref[...])   # (B, H)
  logits_ref[...] = mm(pooled, clsw_ref[...]) + clsb_ref[...]   # (B, LOGIT_PAD)


def _bert_fused_call(x_emb, mask_bias, params, cfg):
  B, S, H = x_emb.shape
  L = cfg["num_layers"]
  nH = cfg["num_heads"]
  Dh = H // nH
  C = cfg["n_classes"]

  # Lane-dense classifier head: pad the n_classes output columns to LOGIT_PAD.
  clsw_pad = jnp.zeros((H, LOGIT_PAD), params["cls_w"].dtype).at[:, :C].set(params["cls_w"])
  clsb_pad = jnp.zeros((1, LOGIT_PAD), jnp.float32).at[:, :C].set(params["cls_b"])

  kernel = functools.partial(
      _bert_fused_kernel,
      batch=B, seq=S, num_layers=L, num_heads=nH, head_dim=Dh, eps=1e-12)

  # Single kernel invocation, no grid: every array (weights ~50 KB + the
  # [B*S, H] activation slab) is a whole-array VMEM block, so there is no
  # per-step grid overhead and no HBM round-trips between sub-ops.
  # TODO(synk): for a real bert-base config, add an "arbitrary" layer grid axis
  # with per-layer weight BlockSpecs to stream/double-buffer weights (v7x has
  # only 64 MiB VMEM), and a size>=2 "parallel" axis so v7x's 2nd TensorCore
  # gets work; at this toy size both would be pure overhead on v5e/v6e.
  logits_pad = pl.pallas_call(
      kernel,
      out_shape=jax.ShapeDtypeStruct((B, LOGIT_PAD), jnp.float32),
  )(x_emb.reshape(B * S, H), mask_bias,
    params["emb_ln_g"], params["emb_ln_b"],
    params["wqkv"], params["bqkv"], params["wo"], params["bo"],
    params["ln1_g"], params["ln1_b"],
    params["wi"], params["bi"], params["wo2"], params["bo2"],
    params["ln2_g"], params["ln2_b"],
    params["pool_w"], params["pool_b"],
    clsw_pad, clsb_pad)
  return logits_pad[:, :C]                                      # (B, n_classes)


# --------------------------- Params & forward (JAX glue) ---------------------

def init_params(key, cfg):
  H, I, L = cfg["hidden"], cfg["intermediate"], cfg["num_layers"]

  def nrm(k, shape, dtype=jnp.float32):
    return (0.02 * jax.random.normal(k, shape, dtype=jnp.float32)).astype(dtype)

  keys = iter(jax.random.split(key, 16))
  return {
      "word_emb": nrm(next(keys), (cfg["vocab_size"], H)),
      "pos_emb": nrm(next(keys), (cfg["max_position"], H)),
      "type_emb": nrm(next(keys), (cfg["type_vocab"], H)),
      "emb_ln_g": jnp.ones((1, H), jnp.float32),
      "emb_ln_b": jnp.zeros((1, H), jnp.float32),
      # Per-layer weights stacked on a leading L axis; matmul weights in bf16.
      "wqkv": nrm(next(keys), (L, H, 3 * H), jnp.bfloat16),
      "bqkv": jnp.zeros((L, 1, 3 * H), jnp.float32),
      "wo": nrm(next(keys), (L, H, H), jnp.bfloat16),
      "bo": jnp.zeros((L, 1, H), jnp.float32),
      "ln1_g": jnp.ones((L, 1, H), jnp.float32),
      "ln1_b": jnp.zeros((L, 1, H), jnp.float32),
      "wi": nrm(next(keys), (L, H, I), jnp.bfloat16),
      "bi": jnp.zeros((L, 1, I), jnp.float32),
      "wo2": nrm(next(keys), (L, I, H), jnp.bfloat16),
      "bo2": jnp.zeros((L, 1, H), jnp.float32),
      "ln2_g": jnp.ones((L, 1, H), jnp.float32),
      "ln2_b": jnp.zeros((L, 1, H), jnp.float32),
      "pool_w": nrm(next(keys), (H, H), jnp.bfloat16),
      "pool_b": jnp.zeros((1, H), jnp.float32),
      "cls_w": nrm(next(keys), (H, cfg["n_classes"]), jnp.bfloat16),
      "cls_b": jnp.zeros((1, cfg["n_classes"]), jnp.float32),
  }


def bert_classifier_forward(params, input_ids, attention_mask, cfg=CFG):
  B, S = input_ids.shape
  # Embedding gathers stay in plain JAX (token_type_ids implicitly all zero).
  emb = (params["word_emb"][input_ids]
         + params["pos_emb"][:S][None, :, :]
         + params["type_emb"][0][None, None, :]).astype(jnp.float32)  # [B, S, H]
  # Additive attention bias, computed once per forward (not per layer/head).
  mask_bias = ((1.0 - attention_mask.astype(jnp.float32)) * -10000.0).reshape(B, 1, S)
  return _bert_fused_call(emb, mask_bias, params, cfg)  # [B, n_classes]


if __name__ == "__main__":
  key = jax.random.PRNGKey(0)
  k_params, k_ids = jax.random.split(key)

  B, S = 2, 8
  params = init_params(k_params, CFG)
  input_ids = jax.random.randint(k_ids, (B, S), 0, CFG["vocab_size"], dtype=jnp.int32)
  attention_mask = jnp.array(
      [[1, 1, 1, 1, 1, 1, 1, 1],
       [1, 1, 1, 1, 1, 1, 0, 0]], dtype=jnp.int32)

  forward = jax.jit(functools.partial(bert_classifier_forward, cfg=CFG))
  logits = forward(params, input_ids, attention_mask)
  jax.block_until_ready(logits)
  assert logits.shape == (B, CFG["n_classes"])
  print("KERNEL_OK")
</pallas_src>

<mosaic_0001>
module attributes {stable_mosaic.version = 11 : i64} {
  func.func @_bert_fused_kernel(%arg0: memref<16x32xf32, #tpu.memory_space<vmem>>, %arg1: memref<2x1x8xf32, #tpu.memory_space<vmem>>, %arg2: memref<1x32xf32, #tpu.memory_space<vmem>>, %arg3: memref<1x32xf32, #tpu.memory_space<vmem>>, %arg4: memref<2x32x96xbf16, #tpu.memory_space<vmem>>, %arg5: memref<2x1x96xf32, #tpu.memory_space<vmem>>, %arg6: memref<2x32x32xbf16, #tpu.memory_space<vmem>>, %arg7: memref<2x1x32xf32, #tpu.memory_space<vmem>>, %arg8: memref<2x1x32xf32, #tpu.memory_space<vmem>>, %arg9: memref<2x1x32xf32, #tpu.memory_space<vmem>>, %arg10: memref<2x32x64xbf16, #tpu.memory_space<vmem>>, %arg11: memref<2x1x64xf32, #tpu.memory_space<vmem>>, %arg12: memref<2x64x32xbf16, #tpu.memory_space<vmem>>, %arg13: memref<2x1x32xf32, #tpu.memory_space<vmem>>, %arg14: memref<2x1x32xf32, #tpu.memory_space<vmem>>, %arg15: memref<2x1x32xf32, #tpu.memory_space<vmem>>, %arg16: memref<32x32xbf16, #tpu.memory_space<vmem>>, %arg17: memref<1x32xf32, #tpu.memory_space<vmem>>, %arg18: memref<32x128xbf16, #tpu.memory_space<vmem>>, %arg19: memref<1x128xf32, #tpu.memory_space<vmem>>, %arg20: memref<2x128xf32, #tpu.memory_space<vmem>>) attributes {dimension_semantics = [], scalar_prefetch = 0 : i64, scratch_operands = 0 : i64, tpu.core_type = #tpu.core_type<tc>} {
    %c0 = arith.constant 0 : index
    %c0_0 = arith.constant 0 : index
    %c0_1 = arith.constant 0 : index
    %0 = vector.load %arg1[%c0, %c0_0, %c0_1] : memref<2x1x8xf32, #tpu.memory_space<vmem>>, vector<2x1x8xf32>
    %c0_2 = arith.constant 0 : index
    %c0_3 = arith.constant 0 : index
    %1 = vector.load %arg0[%c0_2, %c0_3] : memref<16x32xf32, #tpu.memory_space<vmem>>, vector<16x32xf32>
    %c0_4 = arith.constant 0 : index
    %c0_5 = arith.constant 0 : index
    %2 = vector.load %arg2[%c0_4, %c0_5] : memref<1x32xf32, #tpu.memory_space<vmem>>, vector<1x32xf32>
    %c0_6 = arith.constant 0 : index
    %c0_7 = arith.constant 0 : index
    %3 = vector.load %arg3[%c0_6, %c0_7] : memref<1x32xf32, #tpu.memory_space<vmem>>, vector<1x32xf32>
    %cst = arith.constant dense<0.000000e+00> : vector<16xf32>
    %4 = vector.multi_reduction <add>, %1, %cst [1] : vector<16x32xf32> to vector<16xf32>
    %5 = vector.shape_cast %4 : vector<16xf32> to vector<16x1xf32>
    %cst_8 = arith.constant 3.200000e+01 : f32
    %6 = vector.broadcast %cst_8 : f32 to vector<16x1xf32>
    %7 = arith.divf %5, %6 : vector<16x1xf32>
    %8 = vector.broadcast %7 : vector<16x1xf32> to vector<16x32xf32>
    %9 = arith.subf %1, %8 : vector<16x32xf32>
    %10 = arith.mulf %9, %9 : vector<16x32xf32>
    %cst_9 = arith.constant dense<0.000000e+00> : vector<16xf32>
    %11 = vector.multi_reduction <add>, %10, %cst_9 [1] : vector<16x32xf32> to vector<16xf32>
    %12 = vector.shape_cast %11 : vector<16xf32> to vector<16x1xf32>
    %cst_10 = arith.constant 3.200000e+01 : f32
    %13 = vector.broadcast %cst_10 : f32 to vector<16x1xf32>
    %14 = arith.divf %12, %13 : vector<16x1xf32>
    %cst_11 = arith.constant 9.99999996E-13 : f32
    %15 = vector.broadcast %cst_11 : f32 to vector<16x1xf32>
    %16 = arith.addf %14, %15 : vector<16x1xf32>
    %17 = math.rsqrt %16 : vector<16x1xf32>
    %18 = vector.broadcast %17 : vector<16x1xf32> to vector<16x32xf32>
    %19 = arith.mulf %9, %18 : vector<16x32xf32>
    %20 = vector.broadcast %2 : vector<1x32xf32> to vector<16x32xf32>
    %21 = arith.mulf %19, %20 : vector<16x32xf32>
    %22 = vector.broadcast %3 : vector<1x32xf32> to vector<16x32xf32>
    %23 = arith.addf %21, %22 : vector<16x32xf32>
    %c0_12 = arith.constant 0 : index
    %c0_13 = arith.constant 0 : index
    %c0_14 = arith.constant 0 : index
    %24 = vector.load %arg4[%c0_12, %c0_13, %c0_14] : memref<2x32x96xbf16, #tpu.memory_space<vmem>>, vector<1x32x96xbf16>
    %25 = vector.shape_cast %24 : vector<1x32x96xbf16> to vector<32x96xbf16>
    %26 = arith.truncf %23 : vector<16x32xf32> to vector<16x32xbf16>
    %cst_15 = arith.constant dense<0.000000e+00> : vector<16x96xf32>
    %27 = tpu.matmul %26, %25, %cst_15 {dimension_numbers = #tpu.dot_dimension_numbers<[1], [0], [0], [1], [0, 0, 1, 1], [], []>} : vector<16x32xbf16>, vector<32x96xbf16>, vector<16x96xf32> -> vector<16x96xf32>
    %c0_16 = arith.constant 0 : index
    %c0_17 = arith.constant 0 : index
    %c0_18 = arith.constant 0 : index
    %28 = vector.load %arg5[%c0_16, %c0_17, %c0_18] : memref<2x1x96xf32, #tpu.memory_space<vmem>>, vector<1x1x96xf32>
    %29 = vector.shape_cast %28 : vector<1x1x96xf32> to vector<1x96xf32>
    %30 = vector.broadcast %29 : vector<1x96xf32> to vector<16x96xf32>
    %31 = arith.addf %27, %30 : vector<16x96xf32>
    %32 = vector.extract_strided_slice %31 {offsets = [0, 0], sizes = [16, 32], strides = [1, 1]} : vector<16x96xf32> to vector<16x32xf32>
    %cst_19 = arith.constant 0.353553385 : f32
    %33 = vector.broadcast %cst_19 : f32 to vector<16x32xf32>
    %34 = arith.mulf %32, %33 : vector<16x32xf32>
    %35 = arith.truncf %34 : vector<16x32xf32> to vector<16x32xbf16>
    %36 = vector.shape_cast %35 : vector<16x32xbf16> to vector<2x8x32xbf16>
    %37 = vector.extract_strided_slice %31 {offsets = [0, 32], sizes = [16, 32], strides = [1, 1]} : vector<16x96xf32> to vector<16x32xf32>
    %38 = arith.truncf %37 : vector<16x32xf32> to vector<16x32xbf16>
    %39 = vector.shape_cast %38 : vector<16x32xbf16> to vector<2x8x32xbf16>
    %40 = vector.extract_strided_slice %31 {offsets = [0, 64], sizes = [16, 32], strides = [1, 1]} : vector<16x96xf32> to vector<16x32xf32>
    %41 = arith.truncf %40 : vector<16x32xf32> to vector<16x32xbf16>
    %42 = vector.shape_cast %41 : vector<16x32xbf16> to vector<2x8x32xbf16>
    %43 = vector.extract_strided_slice %36 {offsets = [0, 0, 0], sizes = [2, 8, 8], strides = [1, 1, 1]} : vector<2x8x32xbf16> to vector<2x8x8xbf16>
    %44 = vector.extract_strided_slice %39 {offsets = [0, 0, 0], sizes = [2, 8, 8], strides = [1, 1, 1]} : vector<2x8x32xbf16> to vector<2x8x8xbf16>
    "tpu.trace_start"() <{level = 10 : i32, message = "bqd,bkd->bqk"}> : () -> ()
    %cst_20 = arith.constant dense<0.000000e+00> : vector<2x8x8xf32>
    %45 = tpu.matmul %43, %44, %cst_20 {dimension_numbers = #tpu.dot_dimension_numbers<[2], [2], [1], [1], [0, 0, 0, 1, 1, 1], [0], [0]>} : vector<2x8x8xbf16>, vector<2x8x8xbf16>, vector<2x8x8xf32> -> vector<2x8x8xf32>
    "tpu.trace_stop"() : () -> ()
    %46 = vector.broadcast %0 : vector<2x1x8xf32> to vector<2x8x8xf32>
    %47 = arith.addf %45, %46 : vector<2x8x8xf32>
    %cst_21 = arith.constant dense<0xFF800000> : vector<2x8xf32>
    %48 = vector.multi_reduction <maximumf>, %47, %cst_21 [2] : vector<2x8x8xf32> to vector<2x8xf32>
    %49 = vector.shape_cast %48 : vector<2x8xf32> to vector<2x8x1xf32>
    %50 = vector.broadcast %49 : vector<2x8x1xf32> to vector<2x8x8xf32>
    %51 = arith.subf %47, %50 : vector<2x8x8xf32>
    %52 = math.exp %51 : vector<2x8x8xf32>
    %cst_22 = arith.constant dense<0.000000e+00> : vector<2x8xf32>
    %53 = vector.multi_reduction <add>, %52, %cst_22 [2] : vector<2x8x8xf32> to vector<2x8xf32>
    %54 = vector.shape_cast %53 : vector<2x8xf32> to vector<2x8x1xf32>
    %55 = tpu.reciprocal %54 {approx = true} : vector<2x8x1xf32> -> vector<2x8x1xf32>
    %56 = vector.broadcast %55 : vector<2x8x1xf32> to vector<2x8x8xf32>
    %57 = arith.mulf %52, %56 : vector<2x8x8xf32>
    %58 = arith.truncf %57 : vector<2x8x8xf32> to vector<2x8x8xbf16>
    %59 = vector.extract_strided_slice %42 {offsets = [0, 0, 0], sizes = [2, 8, 8], strides = [1, 1, 1]} : vector<2x8x32xbf16> to vector<2x8x8xbf16>
    "tpu.trace_start"() <{level = 10 : i32, message = "bqk,bkd->bqd"}> : () -> ()
    %cst_23 = arith.constant dense<0.000000e+00> : vector<2x8x8xf32>
    %60 = tpu.matmul %58, %59, %cst_23 {dimension_numbers = #tpu.dot_dimension_numbers<[2], [1], [1], [2], [0, 0, 0, 1, 1, 2], [0], [0]>} : vector<2x8x8xbf16>, vector<2x8x8xbf16>, vector<2x8x8xf32> -> vector<2x8x8xf32>
    "tpu.trace_stop"() : () -> ()
    %61 = vector.extract_strided_slice %36 {offsets = [0, 0, 8], sizes = [2, 8, 8], strides = [1, 1, 1]} : vector<2x8x32xbf16> to vector<2x8x8xbf16>
    %62 = vector.extract_strided_slice %39 {offsets = [0, 0, 8], sizes = [2, 8, 8], strides = [1, 1, 1]} : vector<2x8x32xbf16> to vector<2x8x8xbf16>
    "tpu.trace_start"() <{level = 10 : i32, message = "bqd,bkd->bqk"}> : () -> ()
    %cst_24 = arith.constant dense<0.000000e+00> : vector<2x8x8xf32>
    %63 = tpu.matmul %61, %62, %cst_24 {dimension_numbers = #tpu.dot_dimension_numbers<[2], [2], [1], [1], [0, 0, 0, 1, 1, 1], [0], [0]>} : vector<2x8x8xbf16>, vector<2x8x8xbf16>, vector<2x8x8xf32> -> vector<2x8x8xf32>
    "tpu.trace_stop"() : () -> ()
    %64 = vector.broadcast %0 : vector<2x1x8xf32> to vector<2x8x8xf32>
    %65 = arith.addf %63, %64 : vector<2x8x8xf32>
    %cst_25 = arith.constant dense<0xFF800000> : vector<2x8xf32>
    %66 = vector.multi_reduction <maximumf>, %65, %cst_25 [2] : vector<2x8x8xf32> to vector<2x8xf32>
    %67 = vector.shape_cast %66 : vector<2x8xf32> to vector<2x8x1xf32>
    %68 = vector.broadcast %67 : vector<2x8x1xf32> to vector<2x8x8xf32>
    %69 = arith.subf %65, %68 : vector<2x8x8xf32>
    %70 = math.exp %69 : vector<2x8x8xf32>
    %cst_26 = arith.constant dense<0.000000e+00> : vector<2x8xf32>
    %71 = vector.multi_reduction <add>, %70, %cst_26 [2] : vector<2x8x8xf32> to vector<2x8xf32>
    %72 = vector.shape_cast %71 : vector<2x8xf32> to vector<2x8x1xf32>
    %73 = tpu.reciprocal %72 {approx = true} : vector<2x8x1xf32> -> vector<2x8x1xf32>
    %74 = vector.broadcast %73 : vector<2x8x1xf32> to vector<2x8x8xf32>
    %75 = arith.mulf %70, %74 : vector<2x8x8xf32>
    %76 = arith.truncf %75 : vector<2x8x8xf32> to vector<2x8x8xbf16>
    %77 = vector.extract_strided_slice %42 {offsets = [0, 0, 8], sizes = [2, 8, 8], strides = [1, 1, 1]} : vector<2x8x32xbf16> to vector<2x8x8xbf16>
    "tpu.trace_start"() <{level = 10 : i32, message = "bqk,bkd->bqd"}> : () -> ()
    %cst_27 = arith.constant dense<0.000000e+00> : vector<2x8x8xf32>
    %78 = tpu.matmul %76, %77, %cst_27 {dimension_numbers = #tpu.dot_dimension_numbers<[2], [1], [1], [2], [0, 0, 0, 1, 1, 2], [0], [0]>} : vector<2x8x8xbf16>, vector<2x8x8xbf16>, vector<2x8x8xf32> -> vector<2x8x8xf32>
    "tpu.trace_stop"() : () -> ()
    %79 = vector.extract_strided_slice %36 {offsets = [0, 0, 16], sizes = [2, 8, 8], strides = [1, 1, 1]} : vector<2x8x32xbf16> to vector<2x8x8xbf16>
    %80 = vector.extract_strided_slice %39 {offsets = [0, 0, 16], sizes = [2, 8, 8], strides = [1, 1, 1]} : vector<2x8x32xbf16> to vector<2x8x8xbf16>
    "tpu.trace_start"() <{level = 10 : i32, message = "bqd,bkd->bqk"}> : () -> ()
    %cst_28 = arith.constant dense<0.000000e+00> : vector<2x8x8xf32>
    %81 = tpu.matmul %79, %80, %cst_28 {dimension_numbers = #tpu.dot_dimension_numbers<[2], [2], [1], [1], [0, 0, 0, 1, 1, 1], [0], [0]>} : vector<2x8x8xbf16>, vector<2x8x8xbf16>, vector<2x8x8xf32> -> vector<2x8x8xf32>
    "tpu.trace_stop"() : () -> ()
    %82 = vector.broadcast %0 : vector<2x1x8xf32> to vector<2x8x8xf32>
    %83 = arith.addf %81, %82 : vector<2x8x8xf32>
    %cst_29 = arith.constant dense<0xFF800000> : vector<2x8xf32>
    %84 = vector.multi_reduction <maximumf>, %83, %cst_29 [2] : vector<2x8x8xf32> to vector<2x8xf32>
    %85 = vector.shape_cast %84 : vector<2x8xf32> to vector<2x8x1xf32>
    %86 = vector.broadcast %85 : vector<2x8x1xf32> to vector<2x8x8xf32>
    %87 = arith.subf %83, %86 : vector<2x8x8xf32>
    %88 = math.exp %87 : vector<2x8x8xf32>
    %cst_30 = arith.constant dense<0.000000e+00> : vector<2x8xf32>
    %89 = vector.multi_reduction <add>, %88, %cst_30 [2] : vector<2x8x8xf32> to vector<2x8xf32>
    %90 = vector.shape_cast %89 : vector<2x8xf32> to vector<2x8x1xf32>
    %91 = tpu.reciprocal %90 {approx = true} : vector<2x8x1xf32> -> vector<2x8x1xf32>
    %92 = vector.broadcast %91 : vector<2x8x1xf32> to vector<2x8x8xf32>
    %93 = arith.mulf %88, %92 : vector<2x8x8xf32>
    %94 = arith.truncf %93 : vector<2x8x8xf32> to vector<2x8x8xbf16>
    %95 = vector.extract_strided_slice %42 {offsets = [0, 0, 16], sizes = [2, 8, 8], strides = [1, 1, 1]} : vector<2x8x32xbf16> to vector<2x8x8xbf16>
    "tpu.trace_start"() <{level = 10 : i32, message = "bqk,bkd->bqd"}> : () -> ()
    %cst_31 = arith.constant dense<0.000000e+00> : vector<2x8x8xf32>
    %96 = tpu.matmul %94, %95, %cst_31 {dimension_numbers = #tpu.dot_dimension_numbers<[2], [1], [1], [2], [0, 0, 0, 1, 1, 2], [0], [0]>} : vector<2x8x8xbf16>, vector<2x8x8xbf16>, vector<2x8x8xf32> -> vector<2x8x8xf32>
    "tpu.trace_stop"() : () -> ()
    %97 = vector.extract_strided_slice %36 {offsets = [0, 0, 24], sizes = [2, 8, 8], strides = [1, 1, 1]} : vector<2x8x32xbf16> to vector<2x8x8xbf16>
    %98 = vector.extract_strided_slice %39 {offsets = [0, 0, 24], sizes = [2, 8, 8], strides = [1, 1, 1]} : vector<2x8x32xbf16> to vector<2x8x8xbf16>
    "tpu.trace_start"() <{level = 10 : i32, message = "bqd,bkd->bqk"}> : () -> ()
    %cst_32 = arith.constant dense<0.000000e+00> : vector<2x8x8xf32>
    %99 = tpu.matmul %97, %98, %cst_32 {dimension_numbers = #tpu.dot_dimension_numbers<[2], [2], [1], [1], [0, 0, 0, 1, 1, 1], [0], [0]>} : vector<2x8x8xbf16>, vector<2x8x8xbf16>, vector<2x8x8xf32> -> vector<2x8x8xf32>
    "tpu.trace_stop"() : () -> ()
    %100 = vector.broadcast %0 : vector<2x1x8xf32> to vector<2x8x8xf32>
    %101 = arith.addf %99, %100 : vector<2x8x8xf32>
    %cst_33 = arith.constant dense<0xFF800000> : vector<2x8xf32>
    %102 = vector.multi_reduction <maximumf>, %101, %cst_33 [2] : vector<2x8x8xf32> to vector<2x8xf32>
    %103 = vector.shape_cast %102 : vector<2x8xf32> to vector<2x8x1xf32>
    %104 = vector.broadcast %103 : vector<2x8x1xf32> to vector<2x8x8xf32>
    %105 = arith.subf %101, %104 : vector<2x8x8xf32>
    %106 = math.exp %105 : vector<2x8x8xf32>
    %cst_34 = arith.constant dense<0.000000e+00> : vector<2x8xf32>
    %107 = vector.multi_reduction <add>, %106, %cst_34 [2] : vector<2x8x8xf32> to vector<2x8xf32>
    %108 = vector.shape_cast %107 : vector<2x8xf32> to vector<2x8x1xf32>
    %109 = tpu.reciprocal %108 {approx = true} : vector<2x8x1xf32> -> vector<2x8x1xf32>
    %110 = vector.broadcast %109 : vector<2x8x1xf32> to vector<2x8x8xf32>
    %111 = arith.mulf %106, %110 : vector<2x8x8xf32>
    %112 = arith.truncf %111 : vector<2x8x8xf32> to vector<2x8x8xbf16>
    %113 = vector.extract_strided_slice %42 {offsets = [0, 0, 24], sizes = [2, 8, 8], strides = [1, 1, 1]} : vector<2x8x32xbf16> to vector<2x8x8xbf16>
    "tpu.trace_start"() <{level = 10 : i32, message = "bqk,bkd->bqd"}> : () -> ()
    %cst_35 = arith.constant dense<0.000000e+00> : vector<2x8x8xf32>
    %114 = tpu.matmul %112, %113, %cst_35 {dimension_numbers = #tpu.dot_dimension_numbers<[2], [1], [1], [2], [0, 0, 0, 1, 1, 2], [0], [0]>} : vector<2x8x8xbf16>, vector<2x8x8xbf16>, vector<2x8x8xf32> -> vector<2x8x8xf32>
    "tpu.trace_stop"() : () -> ()
    %115 = tpu.concatenate %60, %78, %96, %114 in 2 : vector<2x8x8xf32>, vector<2x8x8xf32>, vector<2x8x8xf32>, vector<2x8x8xf32> -> vector<2x8x32xf32>
    %116 = vector.shape_cast %115 : vector<2x8x32xf32> to vector<16x32xf32>
    %c0_36 = arith.constant 0 : index
    %c0_37 = arith.constant 0 : index
    %c0_38 = arith.constant 0 : index
    %117 = vector.load %arg6[%c0_36, %c0_37, %c0_38] : memref<2x32x32xbf16, #tpu.memory_space<vmem>>, vector<1x32x32xbf16>
    %118 = vector.shape_cast %117 : vector<1x32x32xbf16> to vector<32x32xbf16>
    %119 = arith.truncf %116 : vector<16x32xf32> to vector<16x32xbf16>
    %cst_39 = arith.constant dense<0.000000e+00> : vector<16x32xf32>
    %120 = tpu.matmul %119, %118, %cst_39 {dimension_numbers = #tpu.dot_dimension_numbers<[1], [0], [0], [1], [0, 0, 1, 1], [], []>} : vector<16x32xbf16>, vector<32x32xbf16>, vector<16x32xf32> -> vector<16x32xf32>
    %c0_40 = arith.constant 0 : index
    %c0_41 = arith.constant 0 : index
    %c0_42 = arith.constant 0 : index
    %121 = vector.load %arg7[%c0_40, %c0_41, %c0_42] : memref<2x1x32xf32, #tpu.memory_space<vmem>>, vector<1x1x32xf32>
    %122 = vector.shape_cast %121 : vector<1x1x32xf32> to vector<1x32xf32>
    %123 = vector.broadcast %122 : vector<1x32xf32> to vector<16x32xf32>
    %124 = arith.addf %120, %123 : vector<16x32xf32>
    %125 = arith.addf %124, %23 : vector<16x32xf32>
    %c0_43 = arith.constant 0 : index
    %c0_44 = arith.constant 0 : index
    %c0_45 = arith.constant 0 : index
    %126 = vector.load %arg8[%c0_43, %c0_44, %c0_45] : memref<2x1x32xf32, #tpu.memory_space<vmem>>, vector<1x1x32xf32>
    %127 = vector.shape_cast %126 : vector<1x1x32xf32> to vector<1x32xf32>
    %c0_46 = arith.constant 0 : index
    %c0_47 = arith.constant 0 : index
    %c0_48 = arith.constant 0 : index
    %128 = vector.load %arg9[%c0_46, %c0_47, %c0_48] : memref<2x1x32xf32, #tpu.memory_space<vmem>>, vector<1x1x32xf32>
    %129 = vector.shape_cast %128 : vector<1x1x32xf32> to vector<1x32xf32>
    %cst_49 = arith.constant dense<0.000000e+00> : vector<16xf32>
    %130 = vector.multi_reduction <add>, %125, %cst_49 [1] : vector<16x32xf32> to vector<16xf32>
    %131 = vector.shape_cast %130 : vector<16xf32> to vector<16x1xf32>
    %cst_50 = arith.constant 3.200000e+01 : f32
    %132 = vector.broadcast %cst_50 : f32 to vector<16x1xf32>
    %133 = arith.divf %131, %132 : vector<16x1xf32>
    %134 = vector.broadcast %133 : vector<16x1xf32> to vector<16x32xf32>
    %135 = arith.subf %125, %134 : vector<16x32xf32>
    %136 = arith.mulf %135, %135 : vector<16x32xf32>
    %cst_51 = arith.constant dense<0.000000e+00> : vector<16xf32>
    %137 = vector.multi_reduction <add>, %136, %cst_51 [1] : vector<16x32xf32> to vector<16xf32>
    %138 = vector.shape_cast %137 : vector<16xf32> to vector<16x1xf32>
    %cst_52 = arith.constant 3.200000e+01 : f32
    %139 = vector.broadcast %cst_52 : f32 to vector<16x1xf32>
    %140 = arith.divf %138, %139 : vector<16x1xf32>
    %cst_53 = arith.constant 9.99999996E-13 : f32
    %141 = vector.broadcast %cst_53 : f32 to vector<16x1xf32>
    %142 = arith.addf %140, %141 : vector<16x1xf32>
    %143 = math.rsqrt %142 : vector<16x1xf32>
    %144 = vector.broadcast %143 : vector<16x1xf32> to vector<16x32xf32>
    %145 = arith.mulf %135, %144 : vector<16x32xf32>
    %146 = vector.broadcast %127 : vector<1x32xf32> to vector<16x32xf32>
    %147 = arith.mulf %145, %146 : vector<16x32xf32>
    %148 = vector.broadcast %129 : vector<1x32xf32> to vector<16x32xf32>
    %149 = arith.addf %147, %148 : vector<16x32xf32>
    %c0_54 = arith.constant 0 : index
    %c0_55 = arith.constant 0 : index
    %c0_56 = arith.constant 0 : index
    %150 = vector.load %arg10[%c0_54, %c0_55, %c0_56] : memref<2x32x64xbf16, #tpu.memory_space<vmem>>, vector<1x32x64xbf16>
    %151 = vector.shape_cast %150 : vector<1x32x64xbf16> to vector<32x64xbf16>
    %152 = arith.truncf %149 : vector<16x32xf32> to vector<16x32xbf16>
    %cst_57 = arith.constant dense<0.000000e+00> : vector<16x64xf32>
    %153 = tpu.matmul %152, %151, %cst_57 {dimension_numbers = #tpu.dot_dimension_numbers<[1], [0], [0], [1], [0, 0, 1, 1], [], []>} : vector<16x32xbf16>, vector<32x64xbf16>, vector<16x64xf32> -> vector<16x64xf32>
    %c0_58 = arith.constant 0 : index
    %c0_59 = arith.constant 0 : index
    %c0_60 = arith.constant 0 : index
    %154 = vector.load %arg11[%c0_58, %c0_59, %c0_60] : memref<2x1x64xf32, #tpu.memory_space<vmem>>, vector<1x1x64xf32>
    %155 = vector.shape_cast %154 : vector<1x1x64xf32> to vector<1x64xf32>
    %156 = vector.broadcast %155 : vector<1x64xf32> to vector<16x64xf32>
    %157 = arith.addf %153, %156 : vector<16x64xf32>
    %cst_61 = arith.constant 5.000000e-01 : f32
    %158 = vector.broadcast %cst_61 : f32 to vector<16x64xf32>
    %159 = arith.mulf %158, %157 : vector<16x64xf32>
    %cst_62 = arith.constant 4.471500e-02 : f32
    %160 = vector.broadcast %cst_62 : f32 to vector<16x64xf32>
    %161 = arith.mulf %160, %157 : vector<16x64xf32>
    %162 = arith.mulf %161, %157 : vector<16x64xf32>
    %163 = arith.mulf %162, %157 : vector<16x64xf32>
    %164 = arith.addf %157, %163 : vector<16x64xf32>
    %cst_63 = arith.constant 0.797884583 : f32
    %165 = vector.broadcast %cst_63 : f32 to vector<16x64xf32>
    %166 = arith.mulf %165, %164 : vector<16x64xf32>
    %167 = math.tanh %166 : vector<16x64xf32>
    %cst_64 = arith.constant 1.000000e+00 : f32
    %168 = vector.broadcast %cst_64 : f32 to vector<16x64xf32>
    %169 = arith.addf %168, %167 : vector<16x64xf32>
    %170 = arith.mulf %159, %169 : vector<16x64xf32>
    %c0_65 = arith.constant 0 : index
    %c0_66 = arith.constant 0 : index
    %c0_67 = arith.constant 0 : index
    %171 = vector.load %arg12[%c0_65, %c0_66, %c0_67] : memref<2x64x32xbf16, #tpu.memory_space<vmem>>, vector<1x64x32xbf16>
    %172 = vector.shape_cast %171 : vector<1x64x32xbf16> to vector<64x32xbf16>
    %173 = arith.truncf %170 : vector<16x64xf32> to vector<16x64xbf16>
    %cst_68 = arith.constant dense<0.000000e+00> : vector<16x32xf32>
    %174 = tpu.matmul %173, %172, %cst_68 {dimension_numbers = #tpu.dot_dimension_numbers<[1], [0], [0], [1], [0, 0, 1, 1], [], []>} : vector<16x64xbf16>, vector<64x32xbf16>, vector<16x32xf32> -> vector<16x32xf32>
    %c0_69 = arith.constant 0 : index
    %c0_70 = arith.constant 0 : index
    %c0_71 = arith.constant 0 : index
    %175 = vector.load %arg13[%c0_69, %c0_70, %c0_71] : memref<2x1x32xf32, #tpu.memory_space<vmem>>, vector<1x1x32xf32>
    %176 = vector.shape_cast %175 : vector<1x1x32xf32> to vector<1x32xf32>
    %177 = vector.broadcast %176 : vector<1x32xf32> to vector<16x32xf32>
    %178 = arith.addf %174, %177 : vector<16x32xf32>
    %179 = arith.addf %178, %149 : vector<16x32xf32>
    %c0_72 = arith.constant 0 : index
    %c0_73 = arith.constant 0 : index
    %c0_74 = arith.constant 0 : index
    %180 = vector.load %arg14[%c0_72, %c0_73, %c0_74] : memref<2x1x32xf32, #tpu.memory_space<vmem>>, vector<1x1x32xf32>
    %181 = vector.shape_cast %180 : vector<1x1x32xf32> to vector<1x32xf32>
    %c0_75 = arith.constant 0 : index
    %c0_76 = arith.constant 0 : index
    %c0_77 = arith.constant 0 : index
    %182 = vector.load %arg15[%c0_75, %c0_76, %c0_77] : memref<2x1x32xf32, #tpu.memory_space<vmem>>, vector<1x1x32xf32>
    %183 = vector.shape_cast %182 : vector<1x1x32xf32> to vector<1x32xf32>
    %cst_78 = arith.constant dense<0.000000e+00> : vector<16xf32>
    %184 = vector.multi_reduction <add>, %179, %cst_78 [1] : vector<16x32xf32> to vector<16xf32>
    %185 = vector.shape_cast %184 : vector<16xf32> to vector<16x1xf32>
    %cst_79 = arith.constant 3.200000e+01 : f32
    %186 = vector.broadcast %cst_79 : f32 to vector<16x1xf32>
    %187 = arith.divf %185, %186 : vector<16x1xf32>
    %188 = vector.broadcast %187 : vector<16x1xf32> to vector<16x32xf32>
    %189 = arith.subf %179, %188 : vector<16x32xf32>
    %190 = arith.mulf %189, %189 : vector<16x32xf32>
    %cst_80 = arith.constant dense<0.000000e+00> : vector<16xf32>
    %191 = vector.multi_reduction <add>, %190, %cst_80 [1] : vector<16x32xf32> to vector<16xf32>
    %192 = vector.shape_cast %191 : vector<16xf32> to vector<16x1xf32>
    %cst_81 = arith.constant 3.200000e+01 : f32
    %193 = vector.broadcast %cst_81 : f32 to vector<16x1xf32>
    %194 = arith.divf %192, %193 : vector<16x1xf32>
    %cst_82 = arith.constant 9.99999996E-13 : f32
    %195 = vector.broadcast %cst_82 : f32 to vector<16x1xf32>
    %196 = arith.addf %194, %195 : vector<16x1xf32>
    %197 = math.rsqrt %196 : vector<16x1xf32>
    %198 = vector.broadcast %197 : vector<16x1xf32> to vector<16x32xf32>
    %199 = arith.mulf %189, %198 : vector<16x32xf32>
    %200 = vector.broadcast %181 : vector<1x32xf32> to vector<16x32xf32>
    %201 = arith.mulf %199, %200 : vector<16x32xf32>
    %202 = vector.broadcast %183 : vector<1x32xf32> to vector<16x32xf32>
    %203 = arith.addf %201, %202 : vector<16x32xf32>
    %c1 = arith.constant 1 : index
    %c0_83 = arith.constant 0 : index
    %c0_84 = arith.constant 0 : index
    %204 = vector.load %arg4[%c1, %c0_83, %c0_84] : memref<2x32x96xbf16, #tpu.memory_space<vmem>>, vector<1x32x96xbf16>
    %205 = vector.shape_cast %204 : vector<1x32x96xbf16> to vector<32x96xbf16>
    %206 = arith.truncf %203 : vector<16x32xf32> to vector<16x32xbf16>
    %cst_85 = arith.constant dense<0.000000e+00> : vector<16x96xf32>
    %207 = tpu.matmul %206, %205, %cst_85 {dimension_numbers = #tpu.dot_dimension_numbers<[1], [0], [0], [1], [0, 0, 1, 1], [], []>} : vector<16x32xbf16>, vector<32x96xbf16>, vector<16x96xf32> -> vector<16x96xf32>
    %c1_86 = arith.constant 1 : index
    %c0_87 = arith.constant 0 : index
    %c0_88 = arith.constant 0 : index
    %208 = vector.load %arg5[%c1_86, %c0_87, %c0_88] : memref<2x1x96xf32, #tpu.memory_space<vmem>>, vector<1x1x96xf32>
    %209 = vector.shape_cast %208 : vector<1x1x96xf32> to vector<1x96xf32>
    %210 = vector.broadcast %209 : vector<1x96xf32> to vector<16x96xf32>
    %211 = arith.addf %207, %210 : vector<16x96xf32>
    %212 = vector.extract_strided_slice %211 {offsets = [0, 0], sizes = [16, 32], strides = [1, 1]} : vector<16x96xf32> to vector<16x32xf32>
    %cst_89 = arith.constant 0.353553385 : f32
    %213 = vector.broadcast %cst_89 : f32 to vector<16x32xf32>
    %214 = arith.mulf %212, %213 : vector<16x32xf32>
    %215 = arith.truncf %214 : vector<16x32xf32> to vector<16x32xbf16>
    %216 = vector.shape_cast %215 : vector<16x32xbf16> to vector<2x8x32xbf16>
    %217 = vector.extract_strided_slice %211 {offsets = [0, 32], sizes = [16, 32], strides = [1, 1]} : vector<16x96xf32> to vector<16x32xf32>
    %218 = arith.truncf %217 : vector<16x32xf32> to vector<16x32xbf16>
    %219 = vector.shape_cast %218 : vector<16x32xbf16> to vector<2x8x32xbf16>
    %220 = vector.extract_strided_slice %211 {offsets = [0, 64], sizes = [16, 32], strides = [1, 1]} : vector<16x96xf32> to vector<16x32xf32>
    %221 = arith.truncf %220 : vector<16x32xf32> to vector<16x32xbf16>
    %222 = vector.shape_cast %221 : vector<16x32xbf16> to vector<2x8x32xbf16>
    %223 = vector.extract_strided_slice %216 {offsets = [0, 0, 0], sizes = [2, 8, 8], strides = [1, 1, 1]} : vector<2x8x32xbf16> to vector<2x8x8xbf16>
    %224 = vector.extract_strided_slice %219 {offsets = [0, 0, 0], sizes = [2, 8, 8], strides = [1, 1, 1]} : vector<2x8x32xbf16> to vector<2x8x8xbf16>
    "tpu.trace_start"() <{level = 10 : i32, message = "bqd,bkd->bqk"}> : () -> ()
    %cst_90 = arith.constant dense<0.000000e+00> : vector<2x8x8xf32>
    %225 = tpu.matmul %223, %224, %cst_90 {dimension_numbers = #tpu.dot_dimension_numbers<[2], [2], [1], [1], [0, 0, 0, 1, 1, 1], [0], [0]>} : vector<2x8x8xbf16>, vector<2x8x8xbf16>, vector<2x8x8xf32> -> vector<2x8x8xf32>
    "tpu.trace_stop"() : () -> ()
    %226 = vector.broadcast %0 : vector<2x1x8xf32> to vector<2x8x8xf32>
    %227 = arith.addf %225, %226 : vector<2x8x8xf32>
    %cst_91 = arith.constant dense<0xFF800000> : vector<2x8xf32>
    %228 = vector.multi_reduction <maximumf>, %227, %cst_91 [2] : vector<2x8x8xf32> to vector<2x8xf32>
    %229 = vector.shape_cast %228 : vector<2x8xf32> to vector<2x8x1xf32>
    %230 = vector.broadcast %229 : vector<2x8x1xf32> to vector<2x8x8xf32>
    %231 = arith.subf %227, %230 : vector<2x8x8xf32>
    %232 = math.exp %231 : vector<2x8x8xf32>
    %cst_92 = arith.constant dense<0.000000e+00> : vector<2x8xf32>
    %233 = vector.multi_reduction <add>, %232, %cst_92 [2] : vector<2x8x8xf32> to vector<2x8xf32>
    %234 = vector.shape_cast %233 : vector<2x8xf32> to vector<2x8x1xf32>
    %235 = tpu.reciprocal %234 {approx = true} : vector<2x8x1xf32> -> vector<2x8x1xf32>
    %236 = vector.broadcast %235 : vector<2x8x1xf32> to vector<2x8x8xf32>
    %237 = arith.mulf %232, %236 : vector<2x8x8xf32>
    %238 = arith.truncf %237 : vector<2x8x8xf32> to vector<2x8x8xbf16>
    %239 = vector.extract_strided_slice %222 {offsets = [0, 0, 0], sizes = [2, 8, 8], strides = [1, 1, 1]} : vector<2x8x32xbf16> to vector<2x8x8xbf16>
    "tpu.trace_start"() <{level = 10 : i32, message = "bqk,bkd->bqd"}> : () -> ()
    %cst_93 = arith.constant dense<0.000000e+00> : vector<2x8x8xf32>
    %240 = tpu.matmul %238, %239, %cst_93 {dimension_numbers = #tpu.dot_dimension_numbers<[2], [1], [1], [2], [0, 0, 0, 1, 1, 2], [0], [0]>} : vector<2x8x8xbf16>, vector<2x8x8xbf16>, vector<2x8x8xf32> -> vector<2x8x8xf32>
    "tpu.trace_stop"() : () -> ()
    %241 = vector.extract_strided_slice %216 {offsets = [0, 0, 8], sizes = [2, 8, 8], strides = [1, 1, 1]} : vector<2x8x32xbf16> to vector<2x8x8xbf16>
    %242 = vector.extract_strided_slice %219 {offsets = [0, 0, 8], sizes = [2, 8, 8], strides = [1, 1, 1]} : vector<2x8x32xbf16> to vector<2x8x8xbf16>
    "tpu.trace_start"() <{level = 10 : i32, message = "bqd,bkd->bqk"}> : () -> ()
    %cst_94 = arith.constant dense<0.000000e+00> : vector<2x8x8xf32>
    %243 = tpu.matmul %241, %242, %cst_94 {dimension_numbers = #tpu.dot_dimension_numbers<[2], [2], [1], [1], [0, 0, 0, 1, 1, 1], [0], [0]>} : vector<2x8x8xbf16>, vector<2x8x8xbf16>, vector<2x8x8xf32> -> vector<2x8x8xf32>
    "tpu.trace_stop"() : () -> ()
    %244 = vector.broadcast %0 : vector<2x1x8xf32> to vector<2x8x8xf32>
    %245 = arith.addf %243, %244 : vector<2x8x8xf32>
    %cst_95 = arith.constant dense<0xFF800000> : vector<2x8xf32>
    %246 = vector.multi_reduction <maximumf>, %245, %cst_95 [2] : vector<2x8x8xf32> to vector<2x8xf32>
    %247 = vector.shape_cast %246 : vector<2x8xf32> to vector<2x8x1xf32>
    %248 = vector.broadcast %247 : vector<2x8x1xf32> to vector<2x8x8xf32>
    %249 = arith.subf %245, %248 : vector<2x8x8xf32>
    %250 = math.exp %249 : vector<2x8x8xf32>
    %cst_96 = arith.constant dense<0.000000e+00> : vector<2x8xf32>
    %251 = vector.multi_reduction <add>, %250, %cst_96 [2] : vector<2x8x8xf32> to vector<2x8xf32>
    %252 = vector.shape_cast %251 : vector<2x8xf32> to vector<2x8x1xf32>
    %253 = tpu.reciprocal %252 {approx = true} : vector<2x8x1xf32> -> vector<2x8x1xf32>
    %254 = vector.broadcast %253 : vector<2x8x1xf32> to vector<2x8x8xf32>
    %255 = arith.mulf %250, %254 : vector<2x8x8xf32>
    %256 = arith.truncf %255 : vector<2x8x8xf32> to vector<2x8x8xbf16>
    %257 = vector.extract_strided_slice %222 {offsets = [0, 0, 8], sizes = [2, 8, 8], strides = [1, 1, 1]} : vector<2x8x32xbf16> to vector<2x8x8xbf16>
    "tpu.trace_start"() <{level = 10 : i32, message = "bqk,bkd->bqd"}> : () -> ()
    %cst_97 = arith.constant dense<0.000000e+00> : vector<2x8x8xf32>
    %258 = tpu.matmul %256, %257, %cst_97 {dimension_numbers = #tpu.dot_dimension_numbers<[2], [1], [1], [2], [0, 0, 0, 1, 1, 2], [0], [0]>} : vector<2x8x8xbf16>, vector<2x8x8xbf16>, vector<2x8x8xf32> -> vector<2x8x8xf32>
    "tpu.trace_stop"() : () -> ()
    %259 = vector.extract_strided_slice %216 {offsets = [0, 0, 16], sizes = [2, 8, 8], strides = [1, 1, 1]} : vector<2x8x32xbf16> to vector<2x8x8xbf16>
    %260 = vector.extract_strided_slice %219 {offsets = [0, 0, 16], sizes = [2, 8, 8], strides = [1, 1, 1]} : vector<2x8x32xbf16> to vector<2x8x8xbf16>
    "tpu.trace_start"() <{level = 10 : i32, message = "bqd,bkd->bqk"}> : () -> ()
    %cst_98 = arith.constant dense<0.000000e+00> : vector<2x8x8xf32>
    %261 = tpu.matmul %259, %260, %cst_98 {dimension_numbers = #tpu.dot_dimension_numbers<[2], [2], [1], [1], [0, 0, 0, 1, 1, 1], [0], [0]>} : vector<2x8x8xbf16>, vector<2x8x8xbf16>, vector<2x8x8xf32> -> vector<2x8x8xf32>
    "tpu.trace_stop"() : () -> ()
    %262 = vector.broadcast %0 : vector<2x1x8xf32> to vector<2x8x8xf32>
    %263 = arith.addf %261, %262 : vector<2x8x8xf32>
    %cst_99 = arith.constant dense<0xFF800000> : vector<2x8xf32>
    %264 = vector.multi_reduction <maximumf>, %263, %cst_99 [2] : vector<2x8x8xf32> to vector<2x8xf32>
    %265 = vector.shape_cast %264 : vector<2x8xf32> to vector<2x8x1xf32>
    %266 = vector.broadcast %265 : vector<2x8x1xf32> to vector<2x8x8xf32>
    %267 = arith.subf %263, %266 : vector<2x8x8xf32>
    %268 = math.exp %267 : vector<2x8x8xf32>
    %cst_100 = arith.constant dense<0.000000e+00> : vector<2x8xf32>
    %269 = vector.multi_reduction <add>, %268, %cst_100 [2] : vector<2x8x8xf32> to vector<2x8xf32>
    %270 = vector.shape_cast %269 : vector<2x8xf32> to vector<2x8x1xf32>
    %271 = tpu.reciprocal %270 {approx = true} : vector<2x8x1xf32> -> vector<2x8x1xf32>
    %272 = vector.broadcast %271 : vector<2x8x1xf32> to vector<2x8x8xf32>
    %273 = arith.mulf %268, %272 : vector<2x8x8xf32>
    %274 = arith.truncf %273 : vector<2x8x8xf32> to vector<2x8x8xbf16>
    %275 = vector.extract_strided_slice %222 {offsets = [0, 0, 16], sizes = [2, 8, 8], strides = [1, 1, 1]} : vector<2x8x32xbf16> to vector<2x8x8xbf16>
    "tpu.trace_start"() <{level = 10 : i32, message = "bqk,bkd->bqd"}> : () -> ()
    %cst_101 = arith.constant dense<0.000000e+00> : vector<2x8x8xf32>
    %276 = tpu.matmul %274, %275, %cst_101 {dimension_numbers = #tpu.dot_dimension_numbers<[2], [1], [1], [2], [0, 0, 0, 1, 1, 2], [0], [0]>} : vector<2x8x8xbf16>, vector<2x8x8xbf16>, vector<2x8x8xf32> -> vector<2x8x8xf32>
    "tpu.trace_stop"() : () -> ()
    %277 = vector.extract_strided_slice %216 {offsets = [0, 0, 24], sizes = [2, 8, 8], strides = [1, 1, 1]} : vector<2x8x32xbf16> to vector<2x8x8xbf16>
    %278 = vector.extract_strided_slice %219 {offsets = [0, 0, 24], sizes = [2, 8, 8], strides = [1, 1, 1]} : vector<2x8x32xbf16> to vector<2x8x8xbf16>
    "tpu.trace_start"() <{level = 10 : i32, message = "bqd,bkd->bqk"}> : () -> ()
    %cst_102 = arith.constant dense<0.000000e+00> : vector<2x8x8xf32>
    %279 = tpu.matmul %277, %278, %cst_102 {dimension_numbers = #tpu.dot_dimension_numbers<[2], [2], [1], [1], [0, 0, 0, 1, 1, 1], [0], [0]>} : vector<2x8x8xbf16>, vector<2x8x8xbf16>, vector<2x8x8xf32> -> vector<2x8x8xf32>
    "tpu.trace_stop"() : () -> ()
    %280 = vector.broadcast %0 : vector<2x1x8xf32> to vector<2x8x8xf32>
    %281 = arith.addf %279, %280 : vector<2x8x8xf32>
    %cst_103 = arith.constant dense<0xFF800000> : vector<2x8xf32>
    %282 = vector.multi_reduction <maximumf>, %281, %cst_103 [2] : vector<2x8x8xf32> to vector<2x8xf32>
    %283 = vector.shape_cast %282 : vector<2x8xf32> to vector<2x8x1xf32>
    %284 = vector.broadcast %283 : vector<2x8x1xf32> to vector<2x8x8xf32>
    %285 = arith.subf %281, %284 : vector<2x8x8xf32>
    %286 = math.exp %285 : vector<2x8x8xf32>
    %cst_104 = arith.constant dense<0.000000e+00> : vector<2x8xf32>
    %287 = vector.multi_reduction <add>, %286, %cst_104 [2] : vector<2x8x8xf32> to vector<2x8xf32>
    %288 = vector.shape_cast %287 : vector<2x8xf32> to vector<2x8x1xf32>
    %289 = tpu.reciprocal %288 {approx = true} : vector<2x8x1xf32> -> vector<2x8x1xf32>
    %290 = vector.broadcast %289 : vector<2x8x1xf32> to vector<2x8x8xf32>
    %291 = arith.mulf %286, %290 : vector<2x8x8xf32>
    %292 = arith.truncf %291 : vector<2x8x8xf32> to vector<2x8x8xbf16>
    %293 = vector.extract_strided_slice %222 {offsets = [0, 0, 24], sizes = [2, 8, 8], strides = [1, 1, 1]} : vector<2x8x32xbf16> to vector<2x8x8xbf16>
    "tpu.trace_start"() <{level = 10 : i32, message = "bqk,bkd->bqd"}> : () -> ()
    %cst_105 = arith.constant dense<0.000000e+00> : vector<2x8x8xf32>
    %294 = tpu.matmul %292, %293, %cst_105 {dimension_numbers = #tpu.dot_dimension_numbers<[2], [1], [1], [2], [0, 0, 0, 1, 1, 2], [0], [0]>} : vector<2x8x8xbf16>, vector<2x8x8xbf16>, vector<2x8x8xf32> -> vector<2x8x8xf32>
    "tpu.trace_stop"() : () -> ()
    %295 = tpu.concatenate %240, %258, %276, %294 in 2 : vector<2x8x8xf32>, vector<2x8x8xf32>, vector<2x8x8xf32>, vector<2x8x8xf32> -> vector<2x8x32xf32>
    %296 = vector.shape_cast %295 : vector<2x8x32xf32> to vector<16x32xf32>
    %c1_106 = arith.constant 1 : index
    %c0_107 = arith.constant 0 : index
    %c0_108 = arith.constant 0 : index
    %297 = vector.load %arg6[%c1_106, %c0_107, %c0_108] : memref<2x32x32xbf16, #tpu.memory_space<vmem>>, vector<1x32x32xbf16>
    %298 = vector.shape_cast %297 : vector<1x32x32xbf16> to vector<32x32xbf16>
    %299 = arith.truncf %296 : vector<16x32xf32> to vector<16x32xbf16>
    %cst_109 = arith.constant dense<0.000000e+00> : vector<16x32xf32>
    %300 = tpu.matmul %299, %298, %cst_109 {dimension_numbers = #tpu.dot_dimension_numbers<[1], [0], [0], [1], [0, 0, 1, 1], [], []>} : vector<16x32xbf16>, vector<32x32xbf16>, vector<16x32xf32> -> vector<16x32xf32>
    %c1_110 = arith.constant 1 : index
    %c0_111 = arith.constant 0 : index
    %c0_112 = arith.constant 0 : index
    %301 = vector.load %arg7[%c1_110, %c0_111, %c0_112] : memref<2x1x32xf32, #tpu.memory_space<vmem>>, vector<1x1x32xf32>
    %302 = vector.shape_cast %301 : vector<1x1x32xf32> to vector<1x32xf32>
    %303 = vector.broadcast %302 : vector<1x32xf32> to vector<16x32xf32>
    %304 = arith.addf %300, %303 : vector<16x32xf32>
    %305 = arith.addf %304, %203 : vector<16x32xf32>
    %c1_113 = arith.constant 1 : index
    %c0_114 = arith.constant 0 : index
    %c0_115 = arith.constant 0 : index
    %306 = vector.load %arg8[%c1_113, %c0_114, %c0_115] : memref<2x1x32xf32, #tpu.memory_space<vmem>>, vector<1x1x32xf32>
    %307 = vector.shape_cast %306 : vector<1x1x32xf32> to vector<1x32xf32>
    %c1_116 = arith.constant 1 : index
    %c0_117 = arith.constant 0 : index
    %c0_118 = arith.constant 0 : index
    %308 = vector.load %arg9[%c1_116, %c0_117, %c0_118] : memref<2x1x32xf32, #tpu.memory_space<vmem>>, vector<1x1x32xf32>
    %309 = vector.shape_cast %308 : vector<1x1x32xf32> to vector<1x32xf32>
    %cst_119 = arith.constant dense<0.000000e+00> : vector<16xf32>
    %310 = vector.multi_reduction <add>, %305, %cst_119 [1] : vector<16x32xf32> to vector<16xf32>
    %311 = vector.shape_cast %310 : vector<16xf32> to vector<16x1xf32>
    %cst_120 = arith.constant 3.200000e+01 : f32
    %312 = vector.broadcast %cst_120 : f32 to vector<16x1xf32>
    %313 = arith.divf %311, %312 : vector<16x1xf32>
    %314 = vector.broadcast %313 : vector<16x1xf32> to vector<16x32xf32>
    %315 = arith.subf %305, %314 : vector<16x32xf32>
    %316 = arith.mulf %315, %315 : vector<16x32xf32>
    %cst_121 = arith.constant dense<0.000000e+00> : vector<16xf32>
    %317 = vector.multi_reduction <add>, %316, %cst_121 [1] : vector<16x32xf32> to vector<16xf32>
    %318 = vector.shape_cast %317 : vector<16xf32> to vector<16x1xf32>
    %cst_122 = arith.constant 3.200000e+01 : f32
    %319 = vector.broadcast %cst_122 : f32 to vector<16x1xf32>
    %320 = arith.divf %318, %319 : vector<16x1xf32>
    %cst_123 = arith.constant 9.99999996E-13 : f32
    %321 = vector.broadcast %cst_123 : f32 to vector<16x1xf32>
    %322 = arith.addf %320, %321 : vector<16x1xf32>
    %323 = math.rsqrt %322 : vector<16x1xf32>
    %324 = vector.broadcast %323 : vector<16x1xf32> to vector<16x32xf32>
    %325 = arith.mulf %315, %324 : vector<16x32xf32>
    %326 = vector.broadcast %307 : vector<1x32xf32> to vector<16x32xf32>
    %327 = arith.mulf %325, %326 : vector<16x32xf32>
    %328 = vector.broadcast %309 : vector<1x32xf32> to vector<16x32xf32>
    %329 = arith.addf %327, %328 : vector<16x32xf32>
    %c1_124 = arith.constant 1 : index
    %c0_125 = arith.constant 0 : index
    %c0_126 = arith.constant 0 : index
    %330 = vector.load %arg10[%c1_124, %c0_125, %c0_126] : memref<2x32x64xbf16, #tpu.memory_space<vmem>>, vector<1x32x64xbf16>
    %331 = vector.shape_cast %330 : vector<1x32x64xbf16> to vector<32x64xbf16>
    %332 = arith.truncf %329 : vector<16x32xf32> to vector<16x32xbf16>
    %cst_127 = arith.constant dense<0.000000e+00> : vector<16x64xf32>
    %333 = tpu.matmul %332, %331, %cst_127 {dimension_numbers = #tpu.dot_dimension_numbers<[1], [0], [0], [1], [0, 0, 1, 1], [], []>} : vector<16x32xbf16>, vector<32x64xbf16>, vector<16x64xf32> -> vector<16x64xf32>
    %c1_128 = arith.constant 1 : index
    %c0_129 = arith.constant 0 : index
    %c0_130 = arith.constant 0 : index
    %334 = vector.load %arg11[%c1_128, %c0_129, %c0_130] : memref<2x1x64xf32, #tpu.memory_space<vmem>>, vector<1x1x64xf32>
    %335 = vector.shape_cast %334 : vector<1x1x64xf32> to vector<1x64xf32>
    %336 = vector.broadcast %335 : vector<1x64xf32> to vector<16x64xf32>
    %337 = arith.addf %333, %336 : vector<16x64xf32>
    %cst_131 = arith.constant 5.000000e-01 : f32
    %338 = vector.broadcast %cst_131 : f32 to vector<16x64xf32>
    %339 = arith.mulf %338, %337 : vector<16x64xf32>
    %cst_132 = arith.constant 4.471500e-02 : f32
    %340 = vector.broadcast %cst_132 : f32 to vector<16x64xf32>
    %341 = arith.mulf %340, %337 : vector<16x64xf32>
    %342 = arith.mulf %341, %337 : vector<16x64xf32>
    %343 = arith.mulf %342, %337 : vector<16x64xf32>
    %344 = arith.addf %337, %343 : vector<16x64xf32>
    %cst_133 = arith.constant 0.797884583 : f32
    %345 = vector.broadcast %cst_133 : f32 to vector<16x64xf32>
    %346 = arith.mulf %345, %344 : vector<16x64xf32>
    %347 = math.tanh %346 : vector<16x64xf32>
    %cst_134 = arith.constant 1.000000e+00 : f32
    %348 = vector.broadcast %cst_134 : f32 to vector<16x64xf32>
    %349 = arith.addf %348, %347 : vector<16x64xf32>
    %350 = arith.mulf %339, %349 : vector<16x64xf32>
    %c1_135 = arith.constant 1 : index
    %c0_136 = arith.constant 0 : index
    %c0_137 = arith.constant 0 : index
    %351 = vector.load %arg12[%c1_135, %c0_136, %c0_137] : memref<2x64x32xbf16, #tpu.memory_space<vmem>>, vector<1x64x32xbf16>
    %352 = vector.shape_cast %351 : vector<1x64x32xbf16> to vector<64x32xbf16>
    %353 = arith.truncf %350 : vector<16x64xf32> to vector<16x64xbf16>
    %cst_138 = arith.constant dense<0.000000e+00> : vector<16x32xf32>
    %354 = tpu.matmul %353, %352, %cst_138 {dimension_numbers = #tpu.dot_dimension_numbers<[1], [0], [0], [1], [0, 0, 1, 1], [], []>} : vector<16x64xbf16>, vector<64x32xbf16>, vector<16x32xf32> -> vector<16x32xf32>
    %c1_139 = arith.constant 1 : index
    %c0_140 = arith.constant 0 : index
    %c0_141 = arith.constant 0 : index
    %355 = vector.load %arg13[%c1_139, %c0_140, %c0_141] : memref<2x1x32xf32, #tpu.memory_space<vmem>>, vector<1x1x32xf32>
    %356 = vector.shape_cast %355 : vector<1x1x32xf32> to vector<1x32xf32>
    %357 = vector.broadcast %356 : vector<1x32xf32> to vector<16x32xf32>
    %358 = arith.addf %354, %357 : vector<16x32xf32>
    %359 = arith.addf %358, %329 : vector<16x32xf32>
    %c1_142 = arith.constant 1 : index
    %c0_143 = arith.constant 0 : index
    %c0_144 = arith.constant 0 : index
    %360 = vector.load %arg14[%c1_142, %c0_143, %c0_144] : memref<2x1x32xf32, #tpu.memory_space<vmem>>, vector<1x1x32xf32>
    %361 = vector.shape_cast %360 : vector<1x1x32xf32> to vector<1x32xf32>
    %c1_145 = arith.constant 1 : index
    %c0_146 = arith.constant 0 : index
    %c0_147 = arith.constant 0 : index
    %362 = vector.load %arg15[%c1_145, %c0_146, %c0_147] : memref<2x1x32xf32, #tpu.memory_space<vmem>>, vector<1x1x32xf32>
    %363 = vector.shape_cast %362 : vector<1x1x32xf32> to vector<1x32xf32>
    %cst_148 = arith.constant dense<0.000000e+00> : vector<16xf32>
    %364 = vector.multi_reduction <add>, %359, %cst_148 [1] : vector<16x32xf32> to vector<16xf32>
    %365 = vector.shape_cast %364 : vector<16xf32> to vector<16x1xf32>
    %cst_149 = arith.constant 3.200000e+01 : f32
    %366 = vector.broadcast %cst_149 : f32 to vector<16x1xf32>
    %367 = arith.divf %365, %366 : vector<16x1xf32>
    %368 = vector.broadcast %367 : vector<16x1xf32> to vector<16x32xf32>
    %369 = arith.subf %359, %368 : vector<16x32xf32>
    %370 = arith.mulf %369, %369 : vector<16x32xf32>
    %cst_150 = arith.constant dense<0.000000e+00> : vector<16xf32>
    %371 = vector.multi_reduction <add>, %370, %cst_150 [1] : vector<16x32xf32> to vector<16xf32>
    %372 = vector.shape_cast %371 : vector<16xf32> to vector<16x1xf32>
    %cst_151 = arith.constant 3.200000e+01 : f32
    %373 = vector.broadcast %cst_151 : f32 to vector<16x1xf32>
    %374 = arith.divf %372, %373 : vector<16x1xf32>
    %cst_152 = arith.constant 9.99999996E-13 : f32
    %375 = vector.broadcast %cst_152 : f32 to vector<16x1xf32>
    %376 = arith.addf %374, %375 : vector<16x1xf32>
    %377 = math.rsqrt %376 : vector<16x1xf32>
    %378 = vector.broadcast %377 : vector<16x1xf32> to vector<16x32xf32>
    %379 = arith.mulf %369, %378 : vector<16x32xf32>
    %380 = vector.broadcast %361 : vector<1x32xf32> to vector<16x32xf32>
    %381 = arith.mulf %379, %380 : vector<16x32xf32>
    %382 = vector.broadcast %363 : vector<1x32xf32> to vector<16x32xf32>
    %383 = arith.addf %381, %382 : vector<16x32xf32>
    %384 = vector.shape_cast %383 : vector<16x32xf32> to vector<2x8x32xf32>
    %385 = vector.extract_strided_slice %384 {offsets = [0, 0, 0], sizes = [2, 1, 32], strides = [1, 1, 1]} : vector<2x8x32xf32> to vector<2x1x32xf32>
    %386 = vector.shape_cast %385 : vector<2x1x32xf32> to vector<2x32xf32>
    %c0_153 = arith.constant 0 : index
    %c0_154 = arith.constant 0 : index
    %387 = vector.load %arg16[%c0_153, %c0_154] : memref<32x32xbf16, #tpu.memory_space<vmem>>, vector<32x32xbf16>
    %388 = arith.truncf %386 : vector<2x32xf32> to vector<2x32xbf16>
    %cst_155 = arith.constant dense<0.000000e+00> : vector<2x32xf32>
    %389 = tpu.matmul %388, %387, %cst_155 {dimension_numbers = #tpu.dot_dimension_numbers<[1], [0], [0], [1], [0, 0, 1, 1], [], []>} : vector<2x32xbf16>, vector<32x32xbf16>, vector<2x32xf32> -> vector<2x32xf32>
    %c0_156 = arith.constant 0 : index
    %c0_157 = arith.constant 0 : index
    %390 = vector.load %arg17[%c0_156, %c0_157] : memref<1x32xf32, #tpu.memory_space<vmem>>, vector<1x32xf32>
    %391 = vector.broadcast %390 : vector<1x32xf32> to vector<2x32xf32>
    %392 = arith.addf %389, %391 : vector<2x32xf32>
    %393 = math.tanh %392 : vector<2x32xf32>
    %c0_158 = arith.constant 0 : index
    %c0_159 = arith.constant 0 : index
    %394 = vector.load %arg18[%c0_158, %c0_159] : memref<32x128xbf16, #tpu.memory_space<vmem>>, vector<32x128xbf16>
    %395 = arith.truncf %393 : vector<2x32xf32> to vector<2x32xbf16>
    %cst_160 = arith.constant dense<0.000000e+00> : vector<2x128xf32>
    %396 = tpu.matmul %395, %394, %cst_160 {dimension_numbers = #tpu.dot_dimension_numbers<[1], [0], [0], [1], [0, 0, 1, 1], [], []>} : vector<2x32xbf16>, vector<32x128xbf16>, vector<2x128xf32> -> vector<2x128xf32>
    %c0_161 = arith.constant 0 : index
    %c0_162 = arith.constant 0 : index
    %397 = vector.load %arg19[%c0_161, %c0_162] : memref<1x128xf32, #tpu.memory_space<vmem>>, vector<1x128xf32>
    %398 = vector.broadcast %397 : vector<1x128xf32> to vector<2x128xf32>
    %399 = arith.addf %396, %398 : vector<2x128xf32>
    %c0_163 = arith.constant 0 : index
    %c0_164 = arith.constant 0 : index
    %400 = vector.load %arg20[%c0_163, %c0_164] : memref<2x128xf32, #tpu.memory_space<vmem>>, vector<2x128xf32>
    tpu.vector_store %arg20[%c0_163, %c0_164], %399 {strides = array<i32>} : memref<2x128xf32, #tpu.memory_space<vmem>>, vector<2x128xf32>,
    return
  }
}

</mosaic_0001>

<bundles_post_ra>
// kernel: bert_classifier_forward.1
= control target key start
LH: loop header
LB: loop body
LE: loop exit
PB: predicated region body
PF: predicated region fallthrough
CT: control target
= control target key end

     0   :  { %s4388_s0 = inlined_call_operand.vmem [shape: f32[16,32], index: 0, kind: input, shape index: {}]   ;;  %s4389_s1 = inlined_call_operand.vmem [shape: f32[2,1,8], index: 1, kind: input, shape index: {}]   ;;  %s4390_s2 = inlined_call_operand.vmem [shape: f32[1,32], index: 2, kind: input, shape index: {}]   ;;  %s4391_s3 = inlined_call_operand.vmem [shape: f32[1,32], index: 3, kind: input, shape index: {}]   ;;  %s4392_s4 = inlined_call_operand.vmem [shape: bf16[2,32,96], index: 4, kind: input, shape index: {}]   ;;  %s4393_s5 = inlined_call_operand.vmem [shape: f32[2,1,96], index: 5, kind: input, shape index: {}]   ;;  %s4394_s6 = inlined_call_operand.vmem [shape: bf16[2,32,32], index: 6, kind: input, shape index: {}]   ;;  %s4395_s7 = inlined_call_operand.vmem [shape: f32[2,1,32], index: 7, kind: input, shape index: {}]   ;;  %s4396_s8 = inlined_call_operand.vmem [shape: f32[2,1,32], index: 8, kind: input, shape index: {}]   ;;  %s4397_s9 = inlined_call_operand.vmem [shape: f32[2,1,32], index: 9, kind: input, shape index: {}]   ;;  %s4398_s10 = inlined_call_operand.vmem [shape: bf16[2,32,64], index: 10, kind: input, shape index: {}]   ;;  %s4399_s11 = inlined_call_operand.vmem [shape: f32[2,1,64], index: 11, kind: input, shape index: {}]   ;;  %s4400_s12 = inlined_call_operand.vmem [shape: bf16[2,64,32], index: 12, kind: input, shape index: {}]   ;;  %s4401_s13 = inlined_call_operand.vmem [shape: f32[2,1,32], index: 13, kind: input, shape index: {}]   ;;  %s4402_s14 = inlined_call_operand.vmem [shape: f32[2,1,32], index: 14, kind: input, shape index: {}]   ;;  %s4403_s15 = inlined_call_operand.vmem [shape: f32[2,1,32], index: 15, kind: input, shape index: {}]   ;;  %s4404_s16 = inlined_call_operand.vmem [shape: bf16[32,32], index: 16, kind: input, shape index: {}]   ;;  %s4405_s17 = inlined_call_operand.vmem [shape: f32[1,32], index: 17, kind: input, shape index: {}]   ;;  %s4406_s18 = inlined_call_operand.vmem [shape: bf16[32,128], index: 18, kind: input, shape index: {}]   ;;  %s4407_s19 = inlined_call_operand.vmem [shape: f32[1,128], index: 19, kind: input, shape index: {}]   ;;  %s4408_s20 = inlined_call_operand.hbm [shape: f32[2,128], index: 20, kind: output, shape index: {}]  }
   0x1   :  { %4427 = sst [smem:[#allocation5_spill]] %s4388_s0 }
   0x2   :  { %4428 = sst [smem:[#allocation6_spill]] %s4389_s1 }
   0x3   :  { %4429 = sst [smem:[#allocation7_spill]] %s4390_s2 }
   0x4   :  { %4430 = sst [smem:[#allocation8_spill]] %s4391_s3 }
   0x5   :  { %4431 = sst [smem:[#allocation9_spill]] %s4392_s4 }
   0x6   :  { %s4432_s23 = sld [smem:[#allocation5_spill]]  ;;  %vm73_vm0 = vcmask 261120  }
   0xc   :  { %v69_v0 = vld [vmem:[%s4432_s23] sm:$0xff]  ;;  %v70_v1 = vld [vmem:[%s4432_s23 + $0x8] sm:$0xff] }
   0xd   :  { %v74_v2 = vsel %vm73_vm0, %v69_v0, 0.0  ;;  %v77_v3 = vsel %vm73_vm0, %v70_v1, 0.0 }
   0xe   :  { %75 = vadd.xlane.f32.xlu0 %v74_v2 }
  0x12   :  { %78 = vadd.xlane.f32.xlu0 %v77_v3 }
  0x13   :  { %25 = vsyncpa [#allocation3], 0  ;;  %s4433_s26 = sld [smem:[#allocation9_spill]]  ;;  %v3642_v15 = vmov 0.0   ;;  %vm3643_vm1 = vmmov 0   ;;  %s4434_s30 = sld [smem:[#allocation7_spill]] }
  0x14   :  { %3171 = vmatprep.subr.bf16.mxu0 %v3642_v15  ;;  %3175 = vmatprep.mubr.msk.bf16.mxu0 %vm3643_vm1, %v3642_v15  ;;  %s4435_s1 = sld [smem:[#allocation8_spill]]  ;;  %v2943_v34 = vld [vmem:[%s4393_s5] ss:$0 sm:$0xff]  ;;  %s3644_s24 = smov 96   ;;  %vm212_vm2 = vcmask 64512   ;;  %vm337_vm3 = vcmask 1043456  }
  0x15   :  { %3179 = vmatprep.subr.bf16.mxu1 %v3642_v15  ;;  %3181 = vmatprep.mubr.msk.bf16.mxu1 %vm3643_vm1, %v3642_v15  ;;  %s4436_s3 = sld [smem:[#allocation6_spill]]  ;;  %s3645_s4 = smov 64   ;;  %vm1115_vm4 = vcmask 130048   ;;  %vm1118_vm5 = vcmask 195584   ;;  %vm1361_vm6 = vcmask 523264   ;;  %vm2800_vm7 = vcmask 1041409  }
  0x16   :  { %s3646_s29 = smov 88   ;;  %s3648_s0 = smov 56  }
  0x17   :  { %s4425_s21 = smov 80   ;;  %s4421_s22 = smov 48  }
  0x18   :  { %s4419_s23 = smov 72   ;;  %s4416_s2 = smov 104  }
  0x19   :  { %v3498_v14 = vld [vmem:[%s4433_s26] sm:$0xff]   ;;  %v3499_v16 = vld [vmem:[%s4433_s26 + $0x8] sm:$0xff]   ;;  %s4414_s25 = smov 40   ;;  %s4413_s27 = smov 8  }
  0x1a   :  { %3172 = vmatpush3.bf16.msra.mxu0 %v3498_v14  ;;  %v2941_v25 = vld [vmem:[%s4434_s30] ss:$0 sm:$0xff]  ;;  %s3647_s30 = smov 120   ;;  %s4412_s28 = smov 16  }
  0x1b   :  { %3173 = vmatprep.subr.bf16.mxu0 %v3642_v15  ;;  %v2942_v29 = vld [vmem:[%s4435_s1] ss:$0 sm:$0xff]  ;;  %v3838_v53 = vld [vmem:[%s4436_s3 + $0x1] ss:$0 sm:$0xff]  ;;  %s4423_s1 = smov 112  }
  0x1c   :  { %v3833_v51 = vld [vmem:[%s4436_s3] ss:$0 sm:$0xff] }
  0x1e   :  { %3174 = vmatpush3.bf16.msra.mxu0 %v3499_v16 }
  0x1f   :  { %3185 = vmatprep.subr.bf16.mxu0 %v3642_v15 }
  0x9b   :  { %v76_v4 = vpop.xlane.xlu0 %75 }
  0x9c   :  { %v81_v5 = vmul.f32 0.03125, %v76_v4 }
  0x9e   :  { %v83_v6 = vsub.f32 %v69_v0, %v81_v5 }
  0x9f   :  { %v79_v7 = vpop.xlane.xlu0 %78 }
  0xa0   :  { %v82_v8 = vmul.f32 0.03125, %v79_v7  ;;  %v85_v9 = vmul.f32 %v83_v6, %v83_v6 }
  0xa2   :  { %v84_v10 = vsub.f32 %v70_v1, %v82_v8  ;;  %v87_v11 = vsel %vm73_vm0, %v85_v9, 0.0 }
  0xa3   :  { %88 = vadd.xlane.f32.xlu1 %v87_v11 }
  0xa4   :  { %v86_v12 = vmul.f32 %v84_v10, %v84_v10 }
  0xa6   :  { %v90_v13 = vsel %vm73_vm0, %v86_v12, 0.0 }
  0xa7   :  { %91 = vadd.xlane.f32.xlu1 %v90_v13 }
 0x130   :  { %v89_v17 = vpop.xlane.xlu1 %88 }
 0x131   :  { %v93_v18 = vmul.f32 0.03125, %v89_v17 }
 0x133   :  { %v95_v19 = vadd.f32 1e-12, %v93_v18 }
 0x134   :  { %v92_v20 = vpop.xlane.xlu1 %91 }
 0x135   :  { %3522 = vrsqrt.f32 %v95_v19  ;;  %v94_v21 = vmul.f32 0.03125, %v92_v20 }
 0x137   :  { %v96_v22 = vadd.f32 1e-12, %v94_v21 }
 0x139   :  { %3524 = vrsqrt.f32 %v96_v22 }
 0x13f   :  { %v3523_v23 = vpop.eup %3522 }
 0x140   :  { %v99_v24 = vmul.f32 %v3523_v23, %v83_v6 }
 0x142   :  { %v107_v28 = vmul.f32 %v2941_v25, %v99_v24 }
 0x143   :  { %v3525_v26 = vpop.eup %3524 }
 0x144   :  { %v100_v27 = vmul.f32 %v3525_v26, %v84_v10  ;;  %v3794_v31 = vadd.f32 %v2942_v29, %v107_v28 }
 0x146   :  { %v108_v30 = vmul.f32 %v2941_v25, %v100_v27 }
 0x148   :  { %v3796_v32 = vadd.f32 %v2942_v29, %v108_v30 }
 0x14a   :  { %v121_v33 = vpack.c.bf16 %v3796_v32, %v3794_v31 }
 0x14c   :  { %3176 = vmatmul.mubr.msk.bf16.vlgmr.msra.gmra.mrb[0].mxu0 %vm73_vm0, %v121_v33 }
 0x14d   :  { %3187 = vmatprep.mubr.msk.bf16.mxu0 %vm3643_vm1, %v3642_v15 }
 0x21f   :  { %v178_v35 = vpop.f32.mrb[0].mxu0 }
 0x220   :  { %v179_v36 = vadd.f32 %v2943_v34, %v178_v35  ;;  %v3177_v37 = vpop.f32.mrb[1].mxu0 }
 0x221   :  { %v181_v38 = vpop.f32.mrb[2].mxu0 }
 0x222   :  { %v3806_v39 = vpack.c.bf16 %v179_v36, %v179_v36  ;;  %v182_v40 = vadd.f32 %v2943_v34, %v181_v38  ;;  %v3178_v41 = vpop.f32.mrb[3].mxu0  ;;  %v185_v46 = vmul.f32 0.35355338, %v179_v36 }
 0x224   :  { %v3808_v42 = vpack.c.bf16 %v182_v40, %v182_v40  ;;  %210 = vrot.lane.b32.xlu0 %v3806_v39, %s3644_s24  ;;  %v186_v48 = vmul.f32 0.35355338, %v182_v40  ;;  %v3818_v49 = vpack.c.bf16 %v185_v46, %v185_v46 }
 0x226   :  { %260 = vrot.lane.b32.xlu1 %v3808_v42, %s3644_s24  ;;  %v3820_v50 = vpack.c.bf16 %v186_v48, %v186_v48 }
 0x296   :  { %v211_v43 = vpop.permute.xlu0 %210 }
 0x297   :  { %v217_v44 = vsel %vm212_vm2, %v211_v43, 0 }
 0x298   :  { %3180 = vmatpush3.bf16.xpose.msra.mxu1 %v217_v44  ;;  %v261_v45 = vpop.permute.xlu1 %260 }
 0x299   :  { %v266_v47 = vsel %vm212_vm2, %v261_v45, 0  ;;  %3191 = vmatprep.subr.bf16.mxu1 %v3642_v15 }
 0x29a   :  { %3186 = vmatpush3.bf16.xpose.msra.mxu0 %v266_v47 }
 0x29b   :  { %3197 = vmatprep.subr.bf16.mxu0 %v3642_v15 }
 0x29f   :  { %3182 = vmatmul.mubr.msk.bf16.vlgmr.msra.gmra.mrb[0].mxu1 %vm212_vm2, %v3818_v49 }
 0x2a0   :  { %3193 = vmatprep.mubr.msk.bf16.mxu1 %vm3643_vm1, %v3642_v15 }
 0x2a1   :  { %3188 = vmatmul.mubr.msk.bf16.vlgmr.msra.gmra.mrb[4].mxu0 %vm212_vm2, %v3820_v50 }
 0x2a2   :  { %3199 = vmatprep.mubr.msk.bf16.mxu0 %vm3643_vm1, %v3642_v15 }
 0x372   :  { %v253_v52 = vpop.f32.mrb[0].mxu1 }
 0x373   :  { %v254_v54 = vadd.f32 %v3833_v51, %v253_v52  ;;  %v3183_v55 = vpop.f32.mrb[1].mxu1 }
 0x374   :  { %v256_v56 = vpop.f32.mrb[2].mxu1  ;;  %v302_v57 = vpop.f32.mrb[4].mxu0 }
 0x375   :  { %v303_v58 = vadd.f32 %v3838_v53, %v302_v57  ;;  %v3184_v59 = vpop.f32.mrb[3].mxu1  ;;  %v3189_v60 = vpop.f32.mrb[5].mxu0  ;;  %v308_v61 = vsel %vm212_vm2, %v254_v54, -inf }
 0x376   :  { %v305_v62 = vpop.f32.mrb[6].mxu0  ;;  %309 = vmax.xlane.f32.xlu1 %v308_v61 }
 0x377   :  { %v3190_v63 = vpop.f32.mrb[7].mxu0  ;;  %v311_v0 = vsel %vm212_vm2, %v303_v58, -inf }
 0x378   :  { %312 = vmax.xlane.f32.xlu0 %v311_v0 }
 0x387   :  { %381 = vrot.lane.b32.xlu1 %v3808_v42, %s3645_s4 }
 0x38b   :  { %431 = vrot.lane.b32.xlu1 %v3806_v39, %s3646_s29 }
 0x403   :  { %v310_v1 = vpop.xlane.xlu1 %309 }
 0x404   :  { %v314_v2 = vsub.f32 %v254_v54, %v310_v1 }
 0x405   :  { %v313_v3 = vpop.xlane.xlu0 %312 }
 0x406   :  { %v316_v4 = vmul.f32 1.442695, %v314_v2  ;;  %v315_v5 = vsub.f32 %v303_v58, %v313_v3 }
 0x407   :  { %v382_v6 = vpop.permute.xlu1 %381 }
 0x408   :  { %3526 = vpow2.f32 %v316_v4  ;;  %v318_v7 = vmul.f32 1.442695, %v315_v5  ;;  %v387_v8 = vsel %vm337_vm3, %v382_v6, 0 }
 0x409   :  { %3198 = vmatpush3.bf16.msra.mxu0 %v387_v8 }
 0x40a   :  { %3528 = vpow2.f32 %v318_v7  ;;  %3209 = vmatprep.subr.bf16.mxu0 %v3642_v15 }
 0x40b   :  { %v432_v13 = vpop.permute.xlu1 %431 }
 0x40c   :  { %v437_v25 = vsel %vm212_vm2, %v432_v13, 0 }
 0x412   :  { %v3527_v9 = vpop.eup %3526 }
 0x413   :  { %v320_v10 = vsel %vm212_vm2, %v3527_v9, 0.0 }
 0x414   :  { %v3529_v11 = vpop.eup %3528  ;;  %321 = vadd.xlane.f32.xlu0 %v320_v10 }
 0x415   :  { %v323_v12 = vsel %vm212_vm2, %v3529_v11, 0.0 }
 0x416   :  { %324 = vadd.xlane.f32.xlu1 %v323_v12 }
 0x427   :  { %481 = vrot.lane.b32.xlu1 %v3808_v42, %s3646_s29 }
 0x42a   :  { %332 = vrot.lane.b32.xlu0 %v3806_v39, %s3645_s4 }
 0x42b   :  { %479 = vrot.lane.b32.xlu1 %v3820_v50, %s3647_s30 }
 0x42e   :  { %429 = vrot.lane.b32.xlu0 %v3818_v49, %s3647_s30 }
 0x4a1   :  { %v322_v14 = vpop.xlane.xlu0 %321 }
 0x4a2   :  { %3530 = vrcp.f32 %v322_v14 }
 0x4a3   :  { %v325_v16 = vpop.xlane.xlu1 %324 }
 0x4a4   :  { %3532 = vrcp.f32 %v325_v16 }
 0x4a5   :  { %v333_v17 = vpop.permute.xlu0 %332 }
 0x4a6   :  { %v339_v18 = vsel %vm337_vm3, %v333_v17, 0 }
 0x4a7   :  { %3192 = vmatpush3.bf16.msra.mxu1 %v339_v18  ;;  %v482_v24 = vpop.permute.xlu1 %481 }
 0x4a8   :  { %3203 = vmatprep.subr.bf16.mxu1 %v3642_v15  ;;  %v487_v27 = vsel %vm212_vm2, %v482_v24, 0 }
 0x4a9   :  { %v430_v28 = vpop.permute.xlu0 %429 }
 0x4ab   :  { %v480_v29 = vpop.permute.xlu1 %479 }
 0x4ac   :  { %v3531_v19 = vpop.eup %3530 }
 0x4ad   :  { %v328_v20 = vmul.f32 %v3531_v19, %v3527_v9 }
 0x4ae   :  { %v3533_v21 = vpop.eup %3532 }
 0x4af   :  { %v329_v22 = vmul.f32 %v3533_v21, %v3529_v11  ;;  %v330_v23 = vpack.c.bf16 %v328_v20, %v328_v20 }
 0x4b1   :  { %3194 = vmatmul.mubr.msk.bf16.vlgmr.msra.gmra.mrb[4].mxu1 %vm212_vm2, %v330_v23  ;;  %v331_v26 = vpack.c.bf16 %v329_v22, %v329_v22 }
 0x4b2   :  { %3204 = vmatpush3.bf16.xpose.msra.mxu1 %v437_v25  ;;  %3205 = vmatprep.mubr.msk.bf16.mxu1 %vm3643_vm1, %v3642_v15 }
 0x4b3   :  { %3200 = vmatmul.mubr.msk.bf16.vlgmr.msra.gmra.mrb[8].mxu0 %vm212_vm2, %v331_v26  ;;  %3215 = vmatprep.subr.bf16.mxu1 %v3642_v15 }
 0x4b4   :  { %3210 = vmatpush3.bf16.xpose.msra.mxu0 %v487_v27  ;;  %3211 = vmatprep.mubr.msk.bf16.mxu0 %vm3643_vm1, %v3642_v15 }
 0x4b5   :  { %3221 = vmatprep.subr.bf16.mxu0 %v3642_v15 }
 0x4b9   :  { %3206 = vmatmul.mubr.msk.bf16.vlgmr.msra.gmra.mrb[8].mxu1 %vm212_vm2, %v430_v28 }
 0x4ba   :  { %3217 = vmatprep.mubr.msk.bf16.mxu1 %vm3643_vm1, %v3642_v15 }
 0x4bb   :  { %3212 = vmatmul.mubr.msk.bf16.vlgmr.msra.gmra.mrb[12].mxu0 %vm212_vm2, %v480_v29 }
 0x4bc   :  { %3223 = vmatprep.mubr.msk.bf16.mxu0 %vm3643_vm1, %v3642_v15 }
 0x584   :  { %v3878_v30 = vpop.f32.mrb[4].mxu1 }
 0x585   :  { %v3195_v33 = vpop.f32.mrb[5].mxu1 }
 0x586   :  { %v378_v34 = vpop.f32.mrb[6].mxu1  ;;  %v3880_v35 = vpop.f32.mrb[8].mxu0 }
 0x587   :  { %v3196_v36 = vpop.f32.mrb[7].mxu1  ;;  %v3201_v37 = vpop.f32.mrb[9].mxu0 }
 0x588   :  { %v426_v38 = vpop.f32.mrb[10].mxu0 }
 0x589   :  { %v3202_v40 = vpop.f32.mrb[11].mxu0 }
 0x58c   :  { %v473_v41 = vpop.f32.mrb[8].mxu1 }
 0x58d   :  { %v474_v43 = vadd.f32 %v3833_v51, %v473_v41  ;;  %v3207_v44 = vpop.f32.mrb[9].mxu1 }
 0x58e   :  { %v476_v45 = vpop.f32.mrb[10].mxu1  ;;  %v523_v46 = vpop.f32.mrb[12].mxu0 }
 0x58f   :  { %v524_v47 = vadd.f32 %v3838_v53, %v523_v46  ;;  %v3208_v48 = vpop.f32.mrb[11].mxu1  ;;  %v3213_v52 = vpop.f32.mrb[13].mxu0  ;;  %v529_v54 = vsel %vm212_vm2, %v474_v43, -inf }
 0x590   :  { %530 = vmax.xlane.f32.xlu0 %v529_v54  ;;  %v526_v55 = vpop.f32.mrb[14].mxu0 }
 0x591   :  { %v3214_v56 = vpop.f32.mrb[15].mxu0  ;;  %v532_v57 = vsel %vm212_vm2, %v524_v47, -inf }
 0x592   :  { %533 = vmax.xlane.f32.xlu1 %v532_v57 }
 0x5a3   :  { %601 = vrot.lane.b32.xlu1 %v3808_v42, %s3648_s0 }
 0x5a7   :  { %651 = vrot.lane.b32.xlu1 %v3806_v39, %s4425_s21 }
 0x5ab   :  { %701 = vrot.lane.b32.xlu1 %v3808_v42, %s4425_s21 }
 0x5af   :  { %699 = vrot.lane.b32.xlu1 %v3820_v50, %s4423_s1 }
 0x61d   :  { %v531_v58 = vpop.xlane.xlu0 %530 }
 0x61e   :  { %v535_v59 = vsub.f32 %v474_v43, %v531_v58 }
 0x61f   :  { %v534_v60 = vpop.xlane.xlu1 %533 }
 0x620   :  { %v537_v61 = vmul.f32 1.442695, %v535_v59  ;;  %v536_v62 = vsub.f32 %v524_v47, %v534_v60 }
 0x622   :  { %3534 = vpow2.f32 %v537_v61  ;;  %v539_v63 = vmul.f32 1.442695, %v536_v62 }
 0x623   :  { %v602_v0 = vpop.permute.xlu1 %601 }
 0x624   :  { %3536 = vpow2.f32 %v539_v63  ;;  %v607_v1 = vsel %vm337_vm3, %v602_v0, 0 }
 0x625   :  { %3222 = vmatpush3.bf16.msra.mxu0 %v607_v1 }
 0x626   :  { %3233 = vmatprep.subr.bf16.mxu0 %v3642_v15 }
 0x627   :  { %v652_v11 = vpop.permute.xlu1 %651 }
 0x628   :  { %v657_v18 = vsel %vm212_vm2, %v652_v11, 0 }
 0x62b   :  { %v702_v17 = vpop.permute.xlu1 %701 }
 0x62c   :  { %v3535_v2 = vpop.eup %3534  ;;  %v707_v20 = vsel %vm212_vm2, %v702_v17, 0 }
 0x62d   :  { %v541_v3 = vsel %vm212_vm2, %v3535_v2, 0.0 }
 0x62e   :  { %v3537_v4 = vpop.eup %3536  ;;  %542 = vadd.xlane.f32.xlu0 %v541_v3 }
 0x62f   :  { %v544_v5 = vsel %vm212_vm2, %v3537_v4, 0.0  ;;  %v700_v22 = vpop.permute.xlu1 %699 }
 0x632   :  { %545 = vadd.xlane.f32.xlu0 %v544_v5 }
 0x648   :  { %553 = vrot.lane.b32.xlu0 %v3806_v39, %s3648_s0 }
 0x64c   :  { %649 = vrot.lane.b32.xlu0 %v3818_v49, %s4423_s1 }
 0x6bb   :  { %v543_v6 = vpop.xlane.xlu0 %542 }
 0x6bc   :  { %3538 = vrcp.f32 %v543_v6 }
 0x6bf   :  { %v546_v7 = vpop.xlane.xlu0 %545 }
 0x6c0   :  { %3540 = vrcp.f32 %v546_v7 }
 0x6c3   :  { %v554_v8 = vpop.permute.xlu0 %553 }
 0x6c4   :  { %v559_v9 = vsel %vm337_vm3, %v554_v8, 0 }
 0x6c5   :  { %3216 = vmatpush3.bf16.msra.mxu1 %v559_v9 }
 0x6c6   :  { %v3539_v10 = vpop.eup %3538  ;;  %3227 = vmatprep.subr.bf16.mxu1 %v3642_v15 }
 0x6c7   :  { %v549_v12 = vmul.f32 %v3539_v10, %v3535_v2  ;;  %v650_v21 = vpop.permute.xlu0 %649 }
 0x6c9   :  { %v551_v13 = vpack.c.bf16 %v549_v12, %v549_v12 }
 0x6ca   :  { %v3541_v14 = vpop.eup %3540 }
 0x6cb   :  { %v550_v16 = vmul.f32 %v3541_v14, %v3537_v4  ;;  %3218 = vmatmul.mubr.msk.bf16.vlgmr.msra.gmra.mrb[12].mxu1 %vm212_vm2, %v551_v13 }
 0x6cc   :  { %3229 = vmatprep.mubr.msk.bf16.mxu1 %vm3643_vm1, %v3642_v15 }
 0x6cd   :  { %v552_v19 = vpack.c.bf16 %v550_v16, %v550_v16 }
 0x6ce   :  { %3228 = vmatpush3.bf16.xpose.msra.mxu1 %v657_v18 }
 0x6cf   :  { %3224 = vmatmul.mubr.msk.bf16.vlgmr.msra.gmra.mrb[16].mxu0 %vm212_vm2, %v552_v19  ;;  %3239 = vmatprep.subr.bf16.mxu1 %v3642_v15 }
 0x6d0   :  { %3234 = vmatpush3.bf16.xpose.msra.mxu0 %v707_v20  ;;  %3235 = vmatprep.mubr.msk.bf16.mxu0 %vm3643_vm1, %v3642_v15 }
 0x6d1   :  { %3245 = vmatprep.subr.bf16.mxu0 %v3642_v15 }
 0x6d5   :  { %3230 = vmatmul.mubr.msk.bf16.vlgmr.msra.gmra.mrb[16].mxu1 %vm212_vm2, %v650_v21 }
 0x6d6   :  { %3241 = vmatprep.mubr.msk.bf16.mxu1 %vm3643_vm1, %v3642_v15 }
 0x6d7   :  { %3236 = vmatmul.mubr.msk.bf16.vlgmr.msra.gmra.mrb[20].mxu0 %vm212_vm2, %v700_v22 }
 0x6d8   :  { %3247 = vmatprep.mubr.msk.bf16.mxu0 %vm3643_vm1, %v3642_v15 }
 0x79e   :  { %v3920_v23 = vpop.f32.mrb[12].mxu1 }
 0x79f   :  { %v3219_v24 = vpop.f32.mrb[13].mxu1 }
 0x7a0   :  { %v598_v25 = vpop.f32.mrb[14].mxu1 }
 0x7a1   :  { %v3220_v26 = vpop.f32.mrb[15].mxu1 }
 0x7a2   :  { %v3922_v27 = vpop.f32.mrb[16].mxu0 }
 0x7a3   :  { %v3468_v28 = vpack.i.bf16 %v3922_v27, %v3920_v23  ;;  %v3225_v29 = vpop.f32.mrb[17].mxu0 }
 0x7a4   :  { %v646_v33 = vpop.f32.mrb[18].mxu0 }
 0x7a5   :  { %v3226_v34 = vpop.f32.mrb[19].mxu0 }
 0x7a8   :  { %v693_v36 = vpop.f32.mrb[16].mxu1 }
 0x7a9   :  { %v694_v37 = vadd.f32 %v3833_v51, %v693_v36  ;;  %v3231_v38 = vpop.f32.mrb[17].mxu1 }
 0x7aa   :  { %v696_v40 = vpop.f32.mrb[18].mxu1  ;;  %v743_v41 = vpop.f32.mrb[20].mxu0 }
 0x7ab   :  { %v744_v43 = vadd.f32 %v3838_v53, %v743_v41  ;;  %v3232_v44 = vpop.f32.mrb[19].mxu1  ;;  %v3237_v45 = vpop.f32.mrb[21].mxu0  ;;  %v749_v46 = vsel %vm212_vm2, %v694_v37, -inf }
 0x7ac   :  { %750 = vmax.xlane.f32.xlu0 %v749_v46  ;;  %v746_v47 = vpop.f32.mrb[22].mxu0 }
 0x7ad   :  { %v3238_v48 = vpop.f32.mrb[23].mxu0  ;;  %v752_v52 = vsel %vm212_vm2, %v744_v43, -inf }
 0x7ae   :  { %753 = vmax.xlane.f32.xlu1 %v752_v52 }
 0x7bf   :  { %821 = vrot.lane.b32.xlu1 %v3808_v42, %s4421_s22 }
 0x7c3   :  { %871 = vrot.lane.b32.xlu1 %v3806_v39, %s4419_s23 }
 0x7c7   :  { %921 = vrot.lane.b32.xlu1 %v3808_v42, %s4419_s23  ;;  %s4444_s23 = smov 16  }
 0x7cb   :  { %919 = vrot.lane.b32.xlu1 %v3820_v50, %s4416_s2 }
 0x839   :  { %v751_v54 = vpop.xlane.xlu0 %750 }
 0x83a   :  { %v755_v55 = vsub.f32 %v694_v37, %v751_v54 }
 0x83b   :  { %v754_v56 = vpop.xlane.xlu1 %753 }
 0x83c   :  { %v757_v57 = vmul.f32 1.442695, %v755_v55  ;;  %v756_v58 = vsub.f32 %v744_v43, %v754_v56 }
 0x83e   :  { %3542 = vpow2.f32 %v757_v57  ;;  %v759_v59 = vmul.f32 1.442695, %v756_v58 }
 0x83f   :  { %v822_v60 = vpop.permute.xlu1 %821 }
 0x840   :  { %3544 = vpow2.f32 %v759_v59  ;;  %v827_v61 = vsel %vm337_vm3, %v822_v60, 0 }
 0x841   :  { %3246 = vmatpush3.bf16.msra.mxu0 %v827_v61 }
 0x842   :  { %3257 = vmatprep.subr.bf16.mxu0 %v3642_v15 }
 0x843   :  { %v872_v6 = vpop.permute.xlu1 %871 }
 0x847   :  { %v922_v11 = vpop.permute.xlu1 %921 }
 0x848   :  { %v3543_v62 = vpop.eup %3542  ;;  %v927_v13 = vsel %vm212_vm2, %v922_v11, 0 }
 0x849   :  { %v761_v63 = vsel %vm212_vm2, %v3543_v62, 0.0 }
 0x84a   :  { %v3545_v0 = vpop.eup %3544  ;;  %762 = vadd.xlane.f32.xlu0 %v761_v63 }
 0x84b   :  { %v764_v50 = vsel %vm212_vm2, %v3545_v0, 0.0  ;;  %v920_v16 = vpop.permute.xlu1 %919 }
 0x84e   :  { %765 = vadd.xlane.f32.xlu0 %v764_v50 }
 0x864   :  { %773 = vrot.lane.b32.xlu0 %v3806_v39, %s4421_s22  ;;  %s4443_s22 = smov 8  }
 0x868   :  { %869 = vrot.lane.b32.xlu0 %v3818_v49, %s4416_s2  ;;  %v877_v49 = vsel %vm212_vm2, %v872_v6, 0 }
 0x8d7   :  { %v763_v1 = vpop.xlane.xlu0 %762 }
 0x8d8   :  { %3546 = vrcp.f32 %v763_v1  ;;  %v3500_v1 = vld [vmem:[%s4394_s6] sm:$0xff]  }
 0x8db   :  { %v766_v2 = vpop.xlane.xlu0 %765 }
 0x8dc   :  { %3548 = vrcp.f32 %v766_v2  ;;  %v3501_v2 = vld [vmem:[%s4394_s6 + $0x8] sm:$0xff]  }
 0x8df   :  { %v774_v3 = vpop.permute.xlu0 %773 }
 0x8e0   :  { %v779_v4 = vsel %vm337_vm3, %v774_v3, 0 }
 0x8e1   :  { %3240 = vmatpush3.bf16.msra.mxu1 %v779_v4 }
 0x8e2   :  { %v3547_v5 = vpop.eup %3546  ;;  %3251 = vmatprep.subr.bf16.mxu1 %v3642_v15 }
 0x8e3   :  { %v769_v7 = vmul.f32 %v3547_v5, %v3543_v62  ;;  %v870_v14 = vpop.permute.xlu0 %869 }
 0x8e5   :  { %v771_v8 = vpack.c.bf16 %v769_v7, %v769_v7 }
 0x8e6   :  { %v3549_v9 = vpop.eup %3548 }
 0x8e7   :  { %v770_v10 = vmul.f32 %v3549_v9, %v3545_v0  ;;  %3242 = vmatmul.mubr.msk.bf16.vlgmr.msra.gmra.mrb[20].mxu1 %vm212_vm2, %v771_v8 }
 0x8e8   :  { %3253 = vmatprep.mubr.msk.bf16.mxu1 %vm3643_vm1, %v3642_v15 }
 0x8e9   :  { %v772_v12 = vpack.c.bf16 %v770_v10, %v770_v10 }
 0x8ea   :  { %3252 = vmatpush3.bf16.xpose.msra.mxu1 %v877_v49 }
 0x8eb   :  { %3248 = vmatmul.mubr.msk.bf16.vlgmr.msra.gmra.mrb[24].mxu0 %vm212_vm2, %v772_v12  ;;  %3263 = vmatprep.subr.bf16.mxu1 %v3642_v15 }
 0x8ec   :  { %3258 = vmatpush3.bf16.xpose.msra.mxu0 %v927_v13  ;;  %3259 = vmatprep.mubr.msk.bf16.mxu0 %vm3643_vm1, %v3642_v15 }
 0x8ed   :  { %3269 = vmatprep.subr.bf16.mxu0 %v3642_v15 }
 0x8f1   :  { %3254 = vmatmul.mubr.msk.bf16.vlgmr.msra.gmra.mrb[24].mxu1 %vm212_vm2, %v870_v14 }
 0x8f2   :  { %3265 = vmatprep.mubr.msk.bf16.mxu1 %vm3643_vm1, %v3642_v15 }
 0x8f3   :  { %3260 = vmatmul.mubr.msk.bf16.vlgmr.msra.gmra.mrb[28].mxu0 %vm212_vm2, %v920_v16 }
 0x8f4   :  { %3271 = vmatprep.mubr.msk.bf16.mxu0 %vm3643_vm1, %v3642_v15 }
 0x9ba   :  { %v815_v17 = vpop.f32.mrb[20].mxu1 }
 0x9bb   :  { %v3243_v18 = vpop.f32.mrb[21].mxu1 }
 0x9bc   :  { %v818_v19 = vpop.f32.mrb[22].mxu1 }
 0x9bd   :  { %v3244_v20 = vpop.f32.mrb[23].mxu1 }
 0x9be   :  { %v863_v21 = vpop.f32.mrb[24].mxu0 }
 0x9bf   :  { %v3473_v22 = vpack.i.bf16 %v863_v21, %v815_v17  ;;  %v3249_v24 = vpop.f32.mrb[25].mxu0 }
 0x9c0   :  { %v866_v25 = vpop.f32.mrb[26].mxu0 }
 0x9c1   :  { %v3250_v26 = vpop.f32.mrb[27].mxu0 }
 0x9c4   :  { %v913_v29 = vpop.f32.mrb[24].mxu1 }
 0x9c5   :  { %v914_v33 = vadd.f32 %v3833_v51, %v913_v29  ;;  %v3255_v34 = vpop.f32.mrb[25].mxu1 }
 0x9c6   :  { %v916_v36 = vpop.f32.mrb[26].mxu1  ;;  %v963_v37 = vpop.f32.mrb[28].mxu0 }
 0x9c7   :  { %v964_v38 = vadd.f32 %v3838_v53, %v963_v37  ;;  %v3256_v40 = vpop.f32.mrb[27].mxu1  ;;  %v3261_v41 = vpop.f32.mrb[29].mxu0  ;;  %v969_v43 = vsel %vm212_vm2, %v914_v33, -inf }
 0x9c8   :  { %970 = vmax.xlane.f32.xlu0 %v969_v43  ;;  %v966_v44 = vpop.f32.mrb[30].mxu0 }
 0x9c9   :  { %v3262_v45 = vpop.f32.mrb[31].mxu0  ;;  %v972_v46 = vsel %vm212_vm2, %v964_v38, -inf }
 0x9ca   :  { %973 = vmax.xlane.f32.xlu1 %v972_v46 }
 0x9db   :  { %1041 = vrot.lane.b32.xlu1 %v3808_v42, %s4414_s25 }
 0x9df   :  { %3469 = vrot.lane.b32.xlu1 %v3468_v28, %s4413_s27  ;;  %s4418_s27 = smov 24  }
 0x9e3   :  { %3474 = vrot.lane.b32.xlu1 %v3473_v22, %s4412_s28 }
 0xa55   :  { %v971_v51 = vpop.xlane.xlu0 %970 }
 0xa56   :  { %v975_v53 = vsub.f32 %v914_v33, %v971_v51 }
 0xa57   :  { %v974_v47 = vpop.xlane.xlu1 %973 }
 0xa58   :  { %v977_v48 = vmul.f32 1.442695, %v975_v53  ;;  %v976_v52 = vsub.f32 %v964_v38, %v974_v47 }
 0xa5a   :  { %3550 = vpow2.f32 %v977_v48  ;;  %v979_v54 = vmul.f32 1.442695, %v976_v52 }
 0xa5b   :  { %v1042_v55 = vpop.permute.xlu1 %1041 }
 0xa5c   :  { %3552 = vpow2.f32 %v979_v54  ;;  %v1047_v42 = vsel %vm337_vm3, %v1042_v55, 0 }
 0xa5d   :  { %3270 = vmatpush3.bf16.msra.mxu0 %v1047_v42 }
 0xa5e   :  { %3283 = vmatprep.subr.bf16.mxu0 %v3642_v15 }
 0xa5f   :  { %v3470_v49 = vpop.permute.xlu1 %3469 }
 0xa60   :  { %v3472_v13 = vunpack.i.h.bf16 %v3470_v49  ;;  %v3471_v14 = vunpack.i.l.bf16 %v3470_v49 }
 0xa62   :  { %v1114_v19 = vsel %vm212_vm2, %v3880_v35, %v3472_v13  ;;  %v1113_v20 = vsel %vm212_vm2, %v3878_v30, %v3471_v14  ;;  %v2969_v30 = vld [vmem:[%s4395_s7] ss:$0 sm:$0xff] }
 0xa63   :  { %v3475_v12 = vpop.permute.xlu1 %3474 }
 0xa64   :  { %v3551_v56 = vpop.eup %3550  ;;  %v3477_v16 = vunpack.i.h.bf16 %v3475_v12  ;;  %v3476_v17 = vunpack.i.l.bf16 %v3475_v12 }
 0xa65   :  { %v981_v23 = vsel %vm212_vm2, %v3551_v56, 0.0 }
 0xa66   :  { %v3553_v27 = vpop.eup %3552  ;;  %982 = vadd.xlane.f32.xlu0 %v981_v23  ;;  %v1116_v24 = vsel %vm1115_vm4, %v1113_v20, %v3476_v17  ;;  %v1117_v25 = vsel %vm1115_vm4, %v1114_v19, %v3477_v16 }
 0xa67   :  { %v984_v28 = vsel %vm212_vm2, %v3553_v27, 0.0 }
 0xa6a   :  { %985 = vadd.xlane.f32.xlu0 %v984_v28 }
 0xa80   :  { %993 = vrot.lane.b32.xlu0 %v3806_v39, %s4414_s25  ;;  %s4442_s25 = smov 40  }
 0xaf3   :  { %v983_v57 = vpop.xlane.xlu0 %982 }
 0xaf4   :  { %3554 = vrcp.f32 %v983_v57 }
 0xaf7   :  { %v986_v58 = vpop.xlane.xlu0 %985 }
 0xaf8   :  { %3556 = vrcp.f32 %v986_v58 }
 0xafb   :  { %v994_v59 = vpop.permute.xlu0 %993 }
 0xafc   :  { %v999_v60 = vsel %vm337_vm3, %v994_v59, 0 }
 0xafd   :  { %3264 = vmatpush3.bf16.msra.mxu1 %v999_v60 }
 0xafe   :  { %v3555_v61 = vpop.eup %3554  ;;  %3275 = vmatprep.subr.bf16.mxu1 %v3642_v15 }
 0xaff   :  { %v989_v62 = vmul.f32 %v3555_v61, %v3551_v56  ;;  %v3503_v56 = vld [vmem:[%s4398_s10 + $0x8] sm:$0xff]  }
 0xb01   :  { %v991_v63 = vpack.c.bf16 %v989_v62, %v989_v62  ;;  %v2973_v62 = vld [vmem:[%s4396_s8] ss:$0 sm:$0xff] }
 0xb02   :  { %v3557_v0 = vpop.eup %3556 }
 0xb03   :  { %v990_v50 = vmul.f32 %v3557_v0, %v3553_v27  ;;  %3266 = vmatmul.mubr.msk.bf16.vlgmr.msra.gmra.mrb[28].mxu1 %vm212_vm2, %v991_v63 }
 0xb04   :  { %3279 = vmatprep.mubr.msk.bf16.mxu1 %vm3643_vm1, %v3642_v15  ;;  %3276 = vmatpush3.bf16.msra.mxu1 %v3500_v1 }
 0xb05   :  { %v992_v39 = vpack.c.bf16 %v990_v50, %v990_v50  ;;  %3277 = vmatprep.subr.bf16.mxu1 %v3642_v15 }
 0xb07   :  { %3272 = vmatmul.mubr.msk.bf16.vlgmr.msra.gmra.mrb[32].mxu0 %vm212_vm2, %v992_v39  ;;  %v2974_v39 = vld [vmem:[%s4397_s9] ss:$0 sm:$0xff] }
 0xb08   :  { %3287 = vmatprep.mubr.msk.bf16.mxu0 %vm3643_vm1, %v3642_v15  ;;  %3278 = vmatpush3.bf16.msra.mxu1 %v3501_v2 }
 0xb09   :  { %3291 = vmatprep.subr.bf16.mxu1 %v3642_v15 }
 0xbd6   :  { %v1035_v3 = vpop.f32.mrb[28].mxu1 }
 0xbd7   :  { %v3267_v4 = vpop.f32.mrb[29].mxu1 }
 0xbd8   :  { %v1038_v5 = vpop.f32.mrb[30].mxu1 }
 0xbd9   :  { %v3268_v6 = vpop.f32.mrb[31].mxu1  ;;  %v3504_v5 = vld [vmem:[%s4400_s12] sm:$0xff]  }
 0xbda   :  { %v1083_v7 = vpop.f32.mrb[32].mxu0  ;;  %v3505_v6 = vld [vmem:[%s4400_s12 + $0x8] sm:$0xff]  }
 0xbdb   :  { %v3478_v8 = vpack.i.bf16 %v1083_v7, %v1035_v3  ;;  %v3273_v9 = vpop.f32.mrb[33].mxu0  ;;  %v3506_v7 = vld [vmem:[%s4400_s12 + $0x10] sm:$0xff]  }
 0xbdc   :  { %v1086_v10 = vpop.f32.mrb[34].mxu0  ;;  %v2975_v9 = vld [vmem:[%s4399_s11] ss:$0 sm:$0xff] }
 0xbdd   :  { %3479 = vrot.lane.b32.xlu0 %v3478_v8, %s4418_s27  ;;  %v3274_v11 = vpop.f32.mrb[35].mxu0  ;;  %v3507_v8 = vld [vmem:[%s4400_s12 + $0x18] sm:$0xff]  }
 0xc4f   :  { %v3480_v18 = vpop.permute.xlu0 %3479 }
 0xc50   :  { %v3482_v21 = vunpack.i.h.bf16 %v3480_v18  ;;  %v3481_v22 = vunpack.i.l.bf16 %v3480_v18 }
 0xc52   :  { %v1120_v26 = vsel %vm1118_vm5, %v1117_v25, %v3482_v21  ;;  %v1119_v29 = vsel %vm1118_vm5, %v1116_v24, %v3481_v22 }
 0xc53   :  { %v1125_v33 = vpack.c.bf16 %v1120_v26, %v1119_v29 }
 0xc55   :  { %3280 = vmatmul.mubr.msk.bf16.vlgmr.msra.gmra.mrb[32].mxu1 %vm73_vm0, %v1125_v33 }
 0xc56   :  { %3299 = vmatprep.mubr.msk.bf16.mxu1 %vm3643_vm1, %v3642_v15  ;;  %3292 = vmatpush3.bf16.msra.mxu1 %v3504_v5 }
 0xc57   :  { %3293 = vmatprep.subr.bf16.mxu1 %v3642_v15 }
 0xc5a   :  { %3294 = vmatpush3.bf16.msra.mxu1 %v3505_v6 }
 0xc5b   :  { %3295 = vmatprep.subr.bf16.mxu1 %v3642_v15 }
 0xc5e   :  { %3296 = vmatpush3.bf16.msra.mxu1 %v3506_v7  ;;  %v2986_v7 = vld [vmem:[%s4403_s15] ss:$0 sm:$0xff] }
 0xc5f   :  { %3297 = vmatprep.subr.bf16.mxu1 %v3642_v15 }
 0xc62   :  { %3298 = vmatpush3.bf16.msra.mxu1 %v3507_v8 }
 0xc63   :  { %3317 = vmatprep.subr.bf16.mxu1 %v3642_v15 }
 0xd28   :  { %v1182_v35 = vpop.f32.mrb[32].mxu1 }
 0xd29   :  { %v1183_v34 = vadd.f32 %v2969_v30, %v1182_v35  ;;  %v3281_v36 = vpop.f32.mrb[33].mxu1 }
 0xd2a   :  { %v1185_v37 = vpop.f32.mrb[34].mxu1 }
 0xd2b   :  { %v1186_v38 = vadd.f32 %v2969_v30, %v1185_v37  ;;  %v3282_v40 = vpop.f32.mrb[35].mxu1  ;;  %v1189_v41 = vadd.f32 %v1183_v34, %v3794_v31 }
 0xd2d   :  { %v1193_v43 = vsel %vm73_vm0, %v1189_v41, 0.0  ;;  %v1190_v44 = vadd.f32 %v1186_v38, %v3796_v32  ;;  %v3502_v32 = vld [vmem:[%s4398_s10] sm:$0xff]  }
 0xd2e   :  { %1194 = vadd.xlane.f32.xlu1 %v1193_v43  ;;  %3284 = vmatpush3.bf16.msra.mxu0 %v3502_v32 }
 0xd2f   :  { %v1196_v45 = vsel %vm73_vm0, %v1190_v44, 0.0  ;;  %3285 = vmatprep.subr.bf16.mxu0 %v3642_v15 }
 0xd30   :  { %1197 = vadd.xlane.f32.xlu0 %v1196_v45 }
 0xd32   :  { %3286 = vmatpush3.bf16.msra.mxu0 %v3503_v56 }
 0xd33   :  { %3303 = vmatprep.subr.bf16.mxu0 %v3642_v15 }
 0xdbb   :  { %v1195_v46 = vpop.xlane.xlu1 %1194 }
 0xdbc   :  { %v1199_v51 = vmul.f32 0.03125, %v1195_v46 }
 0xdbd   :  { %v1198_v53 = vpop.xlane.xlu0 %1197 }
 0xdbe   :  { %v1201_v47 = vsub.f32 %v1189_v41, %v1199_v51  ;;  %v1200_v48 = vmul.f32 0.03125, %v1198_v53  ;;  %v2979_v41 = vld [vmem:[%s4401_s13] ss:$0 sm:$0xff] }
 0xdc0   :  { %v1202_v52 = vsub.f32 %v1190_v44, %v1200_v48  ;;  %v1203_v54 = vmul.f32 %v1201_v47, %v1201_v47 }
 0xdc2   :  { %v1205_v55 = vsel %vm73_vm0, %v1203_v54, 0.0  ;;  %v1204_v42 = vmul.f32 %v1202_v52, %v1202_v52 }
 0xdc3   :  { %1206 = vadd.xlane.f32.xlu0 %v1205_v55 }
 0xdc4   :  { %v1208_v31 = vsel %vm73_vm0, %v1204_v42, 0.0 }
 0xdc7   :  { %1209 = vadd.xlane.f32.xlu0 %v1208_v31 }
 0xe50   :  { %v1207_v23 = vpop.xlane.xlu0 %1206 }
 0xe51   :  { %v1211_v27 = vmul.f32 0.03125, %v1207_v23 }
 0xe53   :  { %v1213_v28 = vadd.f32 1e-12, %v1211_v27 }
 0xe54   :  { %v1210_v57 = vpop.xlane.xlu0 %1209 }
 0xe55   :  { %3558 = vrsqrt.f32 %v1213_v28  ;;  %v1212_v58 = vmul.f32 0.03125, %v1210_v57 }
 0xe57   :  { %v1214_v59 = vadd.f32 1e-12, %v1212_v58 }
 0xe59   :  { %3560 = vrsqrt.f32 %v1214_v59  ;;  %v3508_v59 = vld [vmem:[%s4433_s26 + $0x10] sm:$0xff]  }
 0xe5f   :  { %v3559_v60 = vpop.eup %3558 }
 0xe60   :  { %v1217_v61 = vmul.f32 %v3559_v60, %v1201_v47  ;;  %v3509_v60 = vld [vmem:[%s4433_s26 + $0x18] sm:$0xff]  }
 0xe62   :  { %v1225_v0 = vmul.f32 %v2973_v62, %v1217_v61 }
 0xe63   :  { %v3561_v63 = vpop.eup %3560 }
 0xe64   :  { %v1218_v50 = vmul.f32 %v3561_v63, %v1202_v52  ;;  %v1233_v2 = vadd.f32 %v2974_v39, %v1225_v0 }
 0xe66   :  { %v1226_v1 = vmul.f32 %v2973_v62, %v1218_v50 }
 0xe68   :  { %v1234_v3 = vadd.f32 %v2974_v39, %v1226_v1 }
 0xe6a   :  { %v1239_v4 = vpack.c.bf16 %v1234_v3, %v1233_v2 }
 0xe6c   :  { %3288 = vmatmul.mubr.msk.bf16.vlgmr.msra.gmra.mrb[36].mxu0 %vm73_vm0, %v1239_v4 }
 0xe6d   :  { %3307 = vmatprep.mubr.msk.bf16.mxu0 %vm3643_vm1, %v3642_v15  ;;  %3304 = vmatpush3.bf16.msra.mxu0 %v3508_v59 }
 0xe6e   :  { %3305 = vmatprep.subr.bf16.mxu0 %v3642_v15 }
 0xe71   :  { %3306 = vmatpush3.bf16.msra.mxu0 %v3509_v60 }
 0xe72   :  { %3311 = vmatprep.subr.bf16.mxu0 %v3642_v15 }
 0xf3f   :  { %v1296_v10 = vpop.f32.mrb[36].mxu0 }
 0xf40   :  { %v1297_v11 = vadd.f32 %v2975_v9, %v1296_v10  ;;  %v3289_v49 = vpop.f32.mrb[37].mxu0 }
 0xf41   :  { %v1299_v12 = vpop.f32.mrb[38].mxu0  ;;  %v2992_v49 = vld [vmem:[%s4393_s5 + $0x1] ss:$0 sm:$0xff]  ;;  %s4445_s5 = smov 24  }
 0xf42   :  { %v1305_v13 = vmul.f32 0.044715, %v1297_v11  ;;  %v1300_v14 = vadd.f32 %v2975_v9, %v1299_v12  ;;  %v3290_v16 = vpop.f32.mrb[39].mxu0  ;;  %v1303_v35 = vmul.f32 0.5, %v1297_v11 }
 0xf44   :  { %v1307_v17 = vmul.f32 %v1305_v13, %v1297_v11  ;;  %v1306_v18 = vmul.f32 0.044715, %v1300_v14  ;;  %v1304_v34 = vmul.f32 0.5, %v1300_v14 }
 0xf46   :  { %v1309_v19 = vmul.f32 %v1307_v17, %v1297_v11  ;;  %v1308_v20 = vmul.f32 %v1306_v18, %v1300_v14 }
 0xf48   :  { %v1311_v21 = vadd.f32 %v1309_v19, %v1297_v11  ;;  %v1310_v22 = vmul.f32 %v1308_v20, %v1300_v14 }
 0xf4a   :  { %v1313_v24 = vmul.f32 0.7978846, %v1311_v21  ;;  %v1312_v25 = vadd.f32 %v1310_v22, %v1300_v14 }
 0xf4c   :  { %3562 = vtanh.f32 %v1313_v24  ;;  %v1314_v26 = vmul.f32 0.7978846, %v1312_v25 }
 0xf4e   :  { %3564 = vtanh.f32 %v1314_v26 }
 0xf56   :  { %v3563_v29 = vpop.eup %3562 }
 0xf57   :  { %v1317_v33 = vadd.f32 1.0, %v3563_v29 }
 0xf58   :  { %v3565_v30 = vpop.eup %3564 }
 0xf59   :  { %v1318_v36 = vadd.f32 1.0, %v3565_v30  ;;  %v1319_v37 = vmul.f32 %v1317_v33, %v1303_v35 }
 0xf5b   :  { %v1320_v38 = vmul.f32 %v1318_v36, %v1304_v34  ;;  %v4117_v34 = vld [vmem:[%s4436_s3] ss:$0 sm:$0xff] }
 0xf5d   :  { %v1329_v40 = vpack.c.bf16 %v1320_v38, %v1319_v37 }
 0xf5f   :  { %3300 = vmatmul.mubr.msk.bf16.vlgmr.msra.gmra.mrb[36].mxu1 %vm1361_vm6, %v1329_v40 }
 0xf60   :  { %3319 = vmatprep.mubr.msk.bf16.mxu1 %vm3643_vm1, %v3642_v15 }
0x1032   :  { %v1399_v43 = vpop.f32.mrb[36].mxu1 }
0x1033   :  { %v1400_v44 = vadd.f32 %v2979_v41, %v1399_v43  ;;  %v3301_v45 = vpop.f32.mrb[37].mxu1 }
0x1034   :  { %v1402_v46 = vpop.f32.mrb[38].mxu1 }
0x1035   :  { %v1403_v51 = vadd.f32 %v2979_v41, %v1402_v46  ;;  %v3302_v53 = vpop.f32.mrb[39].mxu1  ;;  %v1406_v47 = vadd.f32 %v1400_v44, %v1233_v2  ;;  %v2985_v2 = vld [vmem:[%s4402_s14] ss:$0 sm:$0xff]  ;;  %v4123_v41 = vld [vmem:[%s4436_s3 + $0x1] ss:$0 sm:$0xff]  ;;  %s4437_s3 = smov 80  }
0x1037   :  { %v1410_v48 = vsel %vm73_vm0, %v1406_v47, 0.0  ;;  %v1407_v52 = vadd.f32 %v1403_v51, %v1234_v3 }
0x1038   :  { %1411 = vadd.xlane.f32.xlu1 %v1410_v48 }
0x1039   :  { %v1413_v54 = vsel %vm73_vm0, %v1407_v52, 0.0 }
0x103a   :  { %1414 = vadd.xlane.f32.xlu0 %v1413_v54 }
0x10c5   :  { %v1412_v55 = vpop.xlane.xlu1 %1411 }
0x10c6   :  { %v1416_v42 = vmul.f32 0.03125, %v1412_v55 }
0x10c7   :  { %v1415_v31 = vpop.xlane.xlu0 %1414 }
0x10c8   :  { %v1418_v32 = vsub.f32 %v1406_v47, %v1416_v42  ;;  %v1417_v56 = vmul.f32 0.03125, %v1415_v31 }
0x10ca   :  { %v1419_v23 = vsub.f32 %v1407_v52, %v1417_v56  ;;  %v1420_v27 = vmul.f32 %v1418_v32, %v1418_v32 }
0x10cc   :  { %v1422_v28 = vsel %vm73_vm0, %v1420_v27, 0.0  ;;  %v1421_v57 = vmul.f32 %v1419_v23, %v1419_v23 }
0x10cd   :  { %1423 = vadd.xlane.f32.xlu1 %v1422_v28 }
0x10ce   :  { %v1425_v58 = vsel %vm73_vm0, %v1421_v57, 0.0 }
0x10cf   :  { %1426 = vadd.xlane.f32.xlu0 %v1425_v58 }
0x115a   :  { %v1424_v61 = vpop.xlane.xlu1 %1423 }
0x115b   :  { %v1428_v62 = vmul.f32 0.03125, %v1424_v61 }
0x115c   :  { %v1427_v63 = vpop.xlane.xlu0 %1426 }
0x115d   :  { %v1430_v0 = vadd.f32 1e-12, %v1428_v62  ;;  %v1429_v50 = vmul.f32 0.03125, %v1427_v63 }
0x115f   :  { %3566 = vrsqrt.f32 %v1430_v0  ;;  %v1431_v39 = vadd.f32 1e-12, %v1429_v50 }
0x1161   :  { %3568 = vrsqrt.f32 %v1431_v39 }
0x1169   :  { %v3567_v1 = vpop.eup %3566 }
0x116a   :  { %v1434_v3 = vmul.f32 %v3567_v1, %v1418_v32 }
0x116b   :  { %v3569_v4 = vpop.eup %3568 }
0x116c   :  { %v1442_v5 = vmul.f32 %v2985_v2, %v1434_v3  ;;  %v1435_v6 = vmul.f32 %v3569_v4, %v1419_v23 }
0x116e   :  { %v1443_v8 = vmul.f32 %v2985_v2, %v1435_v6  ;;  %v4078_v9 = vadd.f32 %v2986_v7, %v1442_v5 }
0x1170   :  { %v4080_v10 = vadd.f32 %v2986_v7, %v1443_v8 }
0x1172   :  { %v1457_v11 = vpack.c.bf16 %v4080_v10, %v4078_v9 }
0x1174   :  { %3308 = vmatmul.mubr.msk.bf16.vlgmr.msra.gmra.mrb[40].mxu0 %vm73_vm0, %v1457_v11 }
0x1175   :  { %3313 = vmatprep.mubr.msk.bf16.mxu0 %vm3643_vm1, %v3642_v15 }
0x1247   :  { %v1515_v12 = vpop.f32.mrb[40].mxu0 }
0x1248   :  { %v1516_v13 = vadd.f32 %v2992_v49, %v1515_v12  ;;  %v3309_v14 = vpop.f32.mrb[41].mxu0 }
0x1249   :  { %v1518_v16 = vpop.f32.mrb[42].mxu0 }
0x124a   :  { %v4090_v17 = vpack.c.bf16 %v1516_v13, %v1516_v13  ;;  %v1519_v18 = vadd.f32 %v2992_v49, %v1518_v16  ;;  %v3310_v19 = vpop.f32.mrb[43].mxu0  ;;  %v1522_v25 = vmul.f32 0.35355338, %v1516_v13 }
0x124c   :  { %v4092_v20 = vpack.c.bf16 %v1519_v18, %v1519_v18  ;;  %1535 = vrot.lane.b32.xlu1 %v4090_v17, %s3644_s24  ;;  %v1523_v29 = vmul.f32 0.35355338, %v1519_v18  ;;  %v4102_v33 = vpack.c.bf16 %v1522_v25, %v1522_v25 }
0x124e   :  { %1584 = vrot.lane.b32.xlu0 %v4092_v20, %s3644_s24  ;;  %v4104_v30 = vpack.c.bf16 %v1523_v29, %v1523_v29 }
0x12be   :  { %v1536_v21 = vpop.permute.xlu1 %1535 }
0x12bf   :  { %v1541_v22 = vsel %vm212_vm2, %v1536_v21, 0 }
0x12c0   :  { %3312 = vmatpush3.bf16.xpose.msra.mxu0 %v1541_v22  ;;  %v1585_v24 = vpop.permute.xlu0 %1584 }
0x12c1   :  { %v1590_v26 = vsel %vm212_vm2, %v1585_v24, 0  ;;  %3323 = vmatprep.subr.bf16.mxu0 %v3642_v15 }
0x12c2   :  { %3318 = vmatpush3.bf16.xpose.msra.mxu1 %v1590_v26 }
0x12c3   :  { %3329 = vmatprep.subr.bf16.mxu1 %v3642_v15 }
0x12c7   :  { %3314 = vmatmul.mubr.msk.bf16.vlgmr.msra.gmra.mrb[44].mxu0 %vm212_vm2, %v4102_v33 }
0x12c8   :  { %3325 = vmatprep.mubr.msk.bf16.mxu0 %vm3643_vm1, %v3642_v15 }
0x12c9   :  { %3320 = vmatmul.mubr.msk.bf16.vlgmr.msra.gmra.mrb[40].mxu1 %vm212_vm2, %v4104_v30 }
0x12ca   :  { %3331 = vmatprep.mubr.msk.bf16.mxu1 %vm3643_vm1, %v3642_v15 }
0x139a   :  { %v1577_v35 = vpop.f32.mrb[44].mxu0 }
0x139b   :  { %v1578_v36 = vadd.f32 %v4117_v34, %v1577_v35  ;;  %v3315_v37 = vpop.f32.mrb[45].mxu0 }
0x139c   :  { %v1580_v38 = vpop.f32.mrb[46].mxu0  ;;  %v1626_v40 = vpop.f32.mrb[40].mxu1 }
0x139d   :  { %v1627_v43 = vadd.f32 %v4123_v41, %v1626_v40  ;;  %v3316_v44 = vpop.f32.mrb[47].mxu0  ;;  %v3321_v45 = vpop.f32.mrb[41].mxu1  ;;  %v1632_v46 = vsel %vm212_vm2, %v1578_v36, -inf }
0x139e   :  { %v1629_v51 = vpop.f32.mrb[42].mxu1  ;;  %1633 = vmax.xlane.f32.xlu1 %v1632_v46 }
0x139f   :  { %v3322_v53 = vpop.f32.mrb[43].mxu1  ;;  %v1635_v47 = vsel %vm212_vm2, %v1627_v43, -inf }
0x13a0   :  { %1636 = vmax.xlane.f32.xlu0 %v1635_v47 }
0x13af   :  { %1656 = vrot.lane.b32.xlu1 %v4090_v17, %s3645_s4 }
0x142b   :  { %v1634_v48 = vpop.xlane.xlu1 %1633 }
0x142c   :  { %v1638_v52 = vsub.f32 %v1578_v36, %v1634_v48 }
0x142d   :  { %v1637_v54 = vpop.xlane.xlu0 %1636 }
0x142e   :  { %v1640_v55 = vmul.f32 1.442695, %v1638_v52  ;;  %v1639_v42 = vsub.f32 %v1627_v43, %v1637_v54 }
0x142f   :  { %v1657_v31 = vpop.permute.xlu1 %1656 }
0x1430   :  { %3570 = vpow2.f32 %v1640_v55  ;;  %v1642_v32 = vmul.f32 1.442695, %v1639_v42  ;;  %v1662_v56 = vsel %vm337_vm3, %v1657_v31, 0 }
0x1431   :  { %3324 = vmatpush3.bf16.msra.mxu0 %v1662_v56 }
0x1432   :  { %3572 = vpow2.f32 %v1642_v32  ;;  %3335 = vmatprep.subr.bf16.mxu0 %v3642_v15 }
0x143a   :  { %v3571_v23 = vpop.eup %3570 }
0x143b   :  { %v1644_v27 = vsel %vm212_vm2, %v3571_v23, 0.0 }
0x143c   :  { %v3573_v28 = vpop.eup %3572  ;;  %1645 = vadd.xlane.f32.xlu1 %v1644_v27 }
0x143d   :  { %v1647_v57 = vsel %vm212_vm2, %v3573_v28, 0.0 }
0x143e   :  { %1648 = vadd.xlane.f32.xlu0 %v1647_v57 }
0x144d   :  { %1754 = vrot.lane.b32.xlu1 %v4090_v17, %s3646_s29 }
0x1451   :  { %1804 = vrot.lane.b32.xlu1 %v4092_v20, %s3646_s29  ;;  %s4439_s29 = smov 48  }
0x1454   :  { %1704 = vrot.lane.b32.xlu0 %v4092_v20, %s3645_s4  ;;  %s4438_s4 = smov 112  }
0x1455   :  { %1752 = vrot.lane.b32.xlu1 %v4102_v33, %s3647_s30 }
0x1458   :  { %1802 = vrot.lane.b32.xlu0 %v4104_v30, %s3647_s30  ;;  %s4440_s30 = smov 72  }
0x14c9   :  { %v1646_v58 = vpop.xlane.xlu1 %1645 }
0x14ca   :  { %3574 = vrcp.f32 %v1646_v58 }
0x14cb   :  { %v1649_v59 = vpop.xlane.xlu0 %1648 }
0x14cc   :  { %3576 = vrcp.f32 %v1649_v59 }
0x14cd   :  { %v1755_v62 = vpop.permute.xlu1 %1754 }
0x14ce   :  { %v1760_v3 = vsel %vm212_vm2, %v1755_v62, 0 }
0x14cf   :  { %v1705_v60 = vpop.permute.xlu0 %1704 }
0x14d0   :  { %v1710_v61 = vsel %vm337_vm3, %v1705_v60, 0 }
0x14d1   :  { %3330 = vmatpush3.bf16.msra.mxu1 %v1710_v61  ;;  %v1805_v2 = vpop.permute.xlu1 %1804 }
0x14d2   :  { %3341 = vmatprep.subr.bf16.mxu1 %v3642_v15  ;;  %v1810_v5 = vsel %vm212_vm2, %v1805_v2, 0 }
0x14d3   :  { %v1803_v7 = vpop.permute.xlu0 %1802 }
0x14d4   :  { %v3575_v63 = vpop.eup %3574 }
0x14d5   :  { %v1652_v0 = vmul.f32 %v3575_v63, %v3571_v23  ;;  %v1753_v6 = vpop.permute.xlu1 %1752 }
0x14d6   :  { %v3577_v50 = vpop.eup %3576 }
0x14d7   :  { %v1653_v39 = vmul.f32 %v3577_v50, %v3573_v28  ;;  %v1654_v1 = vpack.c.bf16 %v1652_v0, %v1652_v0 }
0x14d9   :  { %3326 = vmatmul.mubr.msk.bf16.vlgmr.msra.gmra.mrb[48].mxu0 %vm212_vm2, %v1654_v1  ;;  %v1655_v4 = vpack.c.bf16 %v1653_v39, %v1653_v39 }
0x14da   :  { %3336 = vmatpush3.bf16.xpose.msra.mxu0 %v1760_v3  ;;  %3337 = vmatprep.mubr.msk.bf16.mxu0 %vm3643_vm1, %v3642_v15 }
0x14db   :  { %3332 = vmatmul.mubr.msk.bf16.vlgmr.msra.gmra.mrb[44].mxu1 %vm212_vm2, %v1655_v4  ;;  %3347 = vmatprep.subr.bf16.mxu0 %v3642_v15 }
0x14dc   :  { %3342 = vmatpush3.bf16.xpose.msra.mxu1 %v1810_v5  ;;  %3343 = vmatprep.mubr.msk.bf16.mxu1 %vm3643_vm1, %v3642_v15 }
0x14dd   :  { %3353 = vmatprep.subr.bf16.mxu1 %v3642_v15 }
0x14e1   :  { %3338 = vmatmul.mubr.msk.bf16.vlgmr.msra.gmra.mrb[52].mxu0 %vm212_vm2, %v1753_v6 }
0x14e2   :  { %3349 = vmatprep.mubr.msk.bf16.mxu0 %vm3643_vm1, %v3642_v15 }
0x14e3   :  { %3344 = vmatmul.mubr.msk.bf16.vlgmr.msra.gmra.mrb[48].mxu1 %vm212_vm2, %v1803_v7 }
0x14e4   :  { %3355 = vmatprep.mubr.msk.bf16.mxu1 %vm3643_vm1, %v3642_v15 }
0x15ac   :  { %v4162_v8 = vpop.f32.mrb[48].mxu0 }
0x15ad   :  { %v3327_v11 = vpop.f32.mrb[49].mxu0 }
0x15ae   :  { %v1701_v49 = vpop.f32.mrb[50].mxu0  ;;  %v4164_v12 = vpop.f32.mrb[44].mxu1 }
0x15af   :  { %v3328_v13 = vpop.f32.mrb[51].mxu0  ;;  %v3333_v14 = vpop.f32.mrb[45].mxu1 }
0x15b0   :  { %v1749_v16 = vpop.f32.mrb[46].mxu1 }
0x15b1   :  { %v3334_v18 = vpop.f32.mrb[47].mxu1 }
0x15b4   :  { %v1796_v19 = vpop.f32.mrb[52].mxu0 }
0x15b5   :  { %v1797_v21 = vadd.f32 %v4117_v34, %v1796_v19  ;;  %v3339_v22 = vpop.f32.mrb[53].mxu0 }
0x15b6   :  { %v1799_v24 = vpop.f32.mrb[54].mxu0  ;;  %v1846_v25 = vpop.f32.mrb[48].mxu1 }
0x15b7   :  { %v1847_v26 = vadd.f32 %v4123_v41, %v1846_v25  ;;  %v3340_v29 = vpop.f32.mrb[55].mxu0  ;;  %v3345_v35 = vpop.f32.mrb[49].mxu1  ;;  %v1852_v36 = vsel %vm212_vm2, %v1797_v21, -inf }
0x15b8   :  { %v1849_v37 = vpop.f32.mrb[50].mxu1  ;;  %1853 = vmax.xlane.f32.xlu1 %v1852_v36 }
0x15b9   :  { %v3346_v38 = vpop.f32.mrb[51].mxu1  ;;  %v1855_v40 = vsel %vm212_vm2, %v1847_v26, -inf }
0x15ba   :  { %1856 = vmax.xlane.f32.xlu0 %v1855_v40 }
0x15c9   :  { %1876 = vrot.lane.b32.xlu1 %v4090_v17, %s3648_s0 }
0x15cd   :  { %1974 = vrot.lane.b32.xlu1 %v4090_v17, %s4437_s3 }
0x15d1   :  { %2024 = vrot.lane.b32.xlu1 %v4092_v20, %s4437_s3 }
0x15d5   :  { %1972 = vrot.lane.b32.xlu1 %v4102_v33, %s4438_s4 }
0x1645   :  { %v1854_v43 = vpop.xlane.xlu1 %1853 }
0x1646   :  { %v1858_v44 = vsub.f32 %v1797_v21, %v1854_v43 }
0x1647   :  { %v1857_v45 = vpop.xlane.xlu0 %1856 }
0x1648   :  { %v1860_v46 = vmul.f32 1.442695, %v1858_v44  ;;  %v1859_v51 = vsub.f32 %v1847_v26, %v1857_v45 }
0x1649   :  { %v1877_v53 = vpop.permute.xlu1 %1876 }
0x164a   :  { %3578 = vpow2.f32 %v1860_v46  ;;  %v1862_v47 = vmul.f32 1.442695, %v1859_v51  ;;  %v1882_v48 = vsel %vm337_vm3, %v1877_v53, 0 }
0x164b   :  { %3348 = vmatpush3.bf16.msra.mxu0 %v1882_v48 }
0x164c   :  { %3580 = vpow2.f32 %v1862_v47  ;;  %3359 = vmatprep.subr.bf16.mxu0 %v3642_v15 }
0x164d   :  { %v1975_v28 = vpop.permute.xlu1 %1974 }
0x164e   :  { %v1980_v60 = vsel %vm212_vm2, %v1975_v28, 0 }
0x1651   :  { %v2025_v62 = vpop.permute.xlu1 %2024 }
0x1652   :  { %v2030_v0 = vsel %vm212_vm2, %v2025_v62, 0 }
0x1654   :  { %v3579_v52 = vpop.eup %3578 }
0x1655   :  { %v1864_v54 = vsel %vm212_vm2, %v3579_v52, 0.0  ;;  %v1973_v50 = vpop.permute.xlu1 %1972 }
0x1656   :  { %v3581_v55 = vpop.eup %3580  ;;  %1865 = vadd.xlane.f32.xlu0 %v1864_v54 }
0x1657   :  { %v1867_v42 = vsel %vm212_vm2, %v3581_v55, 0.0 }
0x165a   :  { %1868 = vadd.xlane.f32.xlu0 %v1867_v42 }
0x1670   :  { %1924 = vrot.lane.b32.xlu0 %v4092_v20, %s3648_s0  ;;  %s4441_s0 = smov 104  }
0x1674   :  { %2022 = vrot.lane.b32.xlu0 %v4104_v30, %s4438_s4 }
0x16e3   :  { %v1866_v31 = vpop.xlane.xlu0 %1865 }
0x16e4   :  { %3582 = vrcp.f32 %v1866_v31 }
0x16e7   :  { %v1869_v32 = vpop.xlane.xlu0 %1868 }
0x16e8   :  { %3584 = vrcp.f32 %v1869_v32 }
0x16eb   :  { %v1925_v56 = vpop.permute.xlu0 %1924 }
0x16ec   :  { %v1930_v23 = vsel %vm337_vm3, %v1925_v56, 0 }
0x16ed   :  { %3354 = vmatpush3.bf16.msra.mxu1 %v1930_v23 }
0x16ee   :  { %v3583_v27 = vpop.eup %3582  ;;  %3365 = vmatprep.subr.bf16.mxu1 %v3642_v15 }
0x16ef   :  { %v1872_v57 = vmul.f32 %v3583_v27, %v3579_v52  ;;  %v2023_v39 = vpop.permute.xlu0 %2022 }
0x16f1   :  { %v1874_v58 = vpack.c.bf16 %v1872_v57, %v1872_v57 }
0x16f2   :  { %v3585_v59 = vpop.eup %3584 }
0x16f3   :  { %v1873_v61 = vmul.f32 %v3585_v59, %v3581_v55  ;;  %3350 = vmatmul.mubr.msk.bf16.vlgmr.msra.gmra.mrb[56].mxu0 %vm212_vm2, %v1874_v58 }
0x16f4   :  { %3360 = vmatpush3.bf16.xpose.msra.mxu0 %v1980_v60  ;;  %3361 = vmatprep.mubr.msk.bf16.mxu0 %vm3643_vm1, %v3642_v15 }
0x16f5   :  { %v1875_v63 = vpack.c.bf16 %v1873_v61, %v1873_v61  ;;  %3371 = vmatprep.subr.bf16.mxu0 %v3642_v15 }
0x16f7   :  { %3356 = vmatmul.mubr.msk.bf16.vlgmr.msra.gmra.mrb[52].mxu1 %vm212_vm2, %v1875_v63 }
0x16f8   :  { %3366 = vmatpush3.bf16.xpose.msra.mxu1 %v2030_v0  ;;  %3367 = vmatprep.mubr.msk.bf16.mxu1 %vm3643_vm1, %v3642_v15 }
0x16f9   :  { %3377 = vmatprep.subr.bf16.mxu1 %v3642_v15 }
0x16fb   :  { %3362 = vmatmul.mubr.msk.bf16.vlgmr.msra.gmra.mrb[60].mxu0 %vm212_vm2, %v1973_v50 }
0x16fc   :  { %3373 = vmatprep.mubr.msk.bf16.mxu0 %vm3643_vm1, %v3642_v15 }
0x16ff   :  { %3368 = vmatmul.mubr.msk.bf16.vlgmr.msra.gmra.mrb[56].mxu1 %vm212_vm2, %v2023_v39 }
0x1700   :  { %3379 = vmatprep.mubr.msk.bf16.mxu1 %vm3643_vm1, %v3642_v15 }
0x17c6   :  { %v4204_v1 = vpop.f32.mrb[56].mxu0 }
0x17c7   :  { %v3351_v2 = vpop.f32.mrb[57].mxu0 }
0x17c8   :  { %v1921_v3 = vpop.f32.mrb[58].mxu0 }
0x17c9   :  { %v3352_v4 = vpop.f32.mrb[59].mxu0 }
0x17ca   :  { %v4206_v5 = vpop.f32.mrb[52].mxu1 }
0x17cb   :  { %v3483_v6 = vpack.i.bf16 %v4206_v5, %v4204_v1  ;;  %v3357_v7 = vpop.f32.mrb[53].mxu1 }
0x17cc   :  { %v1969_v11 = vpop.f32.mrb[54].mxu1 }
0x17cd   :  { %v3358_v49 = vpop.f32.mrb[55].mxu1 }
0x17ce   :  { %v2016_v13 = vpop.f32.mrb[60].mxu0 }
0x17cf   :  { %v2017_v14 = vadd.f32 %v4117_v34, %v2016_v13  ;;  %v3363_v16 = vpop.f32.mrb[61].mxu0 }
0x17d0   :  { %v2019_v18 = vpop.f32.mrb[62].mxu0 }
0x17d1   :  { %v3364_v19 = vpop.f32.mrb[63].mxu0  ;;  %v2072_v21 = vsel %vm212_vm2, %v2017_v14, -inf }
0x17d2   :  { %v2066_v22 = vpop.f32.mrb[56].mxu1  ;;  %2073 = vmax.xlane.f32.xlu1 %v2072_v21 }
0x17d3   :  { %v2067_v24 = vadd.f32 %v4123_v41, %v2066_v22  ;;  %v3369_v25 = vpop.f32.mrb[57].mxu1 }
0x17d4   :  { %v2069_v26 = vpop.f32.mrb[58].mxu1 }
0x17d5   :  { %v3370_v29 = vpop.f32.mrb[59].mxu1  ;;  %v2075_v35 = vsel %vm212_vm2, %v2067_v24, -inf }
0x17d6   :  { %2076 = vmax.xlane.f32.xlu0 %v2075_v35 }
0x17e3   :  { %2096 = vrot.lane.b32.xlu1 %v4090_v17, %s4439_s29 }
0x17e7   :  { %2194 = vrot.lane.b32.xlu1 %v4090_v17, %s4440_s30 }
0x17eb   :  { %2244 = vrot.lane.b32.xlu1 %v4092_v20, %s4440_s30 }
0x17ef   :  { %2192 = vrot.lane.b32.xlu1 %v4102_v33, %s4441_s0 }
0x185f   :  { %v2074_v36 = vpop.xlane.xlu1 %2073 }
0x1860   :  { %v2078_v37 = vsub.f32 %v2017_v14, %v2074_v36 }
0x1862   :  { %v2080_v38 = vmul.f32 1.442695, %v2078_v37 }
0x1863   :  { %v2077_v40 = vpop.xlane.xlu0 %2076  ;;  %v2097_v43 = vpop.permute.xlu1 %2096 }
0x1864   :  { %3586 = vpow2.f32 %v2080_v38  ;;  %v2079_v44 = vsub.f32 %v2067_v24, %v2077_v40  ;;  %v2102_v45 = vsel %vm337_vm3, %v2097_v43, 0 }
0x1865   :  { %3372 = vmatpush3.bf16.msra.mxu0 %v2102_v45 }
0x1866   :  { %v2082_v46 = vmul.f32 1.442695, %v2079_v44  ;;  %3383 = vmatprep.subr.bf16.mxu0 %v3642_v15 }
0x1867   :  { %v2195_v31 = vpop.permute.xlu1 %2194 }
0x1868   :  { %3588 = vpow2.f32 %v2082_v46  ;;  %v2200_v27 = vsel %vm212_vm2, %v2195_v31, 0 }
0x186e   :  { %v3587_v51 = vpop.eup %3586 }
0x186f   :  { %v2084_v53 = vsel %vm212_vm2, %v3587_v51, 0.0 }
0x1870   :  { %2085 = vadd.xlane.f32.xlu0 %v2084_v53 }
0x1872   :  { %v3589_v47 = vpop.eup %3588 }
0x1873   :  { %v2087_v33 = vsel %vm212_vm2, %v3589_v47, 0.0 }
0x1874   :  { %2088 = vadd.xlane.f32.xlu0 %v2087_v33 }
0x188a   :  { %2144 = vrot.lane.b32.xlu0 %v4092_v20, %s4439_s29 }
0x188e   :  { %2242 = vrot.lane.b32.xlu0 %v4104_v30, %s4441_s0  ;;  %v2245_v30 = vpop.permute.xlu1 %2244 }
0x188f   :  { %v2250_v58 = vsel %vm212_vm2, %v2245_v30, 0 }
0x1892   :  { %v2193_v59 = vpop.permute.xlu1 %2192 }
0x18fd   :  { %v2086_v48 = vpop.xlane.xlu0 %2085 }
0x18fe   :  { %3590 = vrcp.f32 %v2086_v48  ;;  %v3510_v48 = vld [vmem:[%s4394_s6 + $0x10] sm:$0xff]  }
0x1901   :  { %v2089_v52 = vpop.xlane.xlu0 %2088 }
0x1902   :  { %3592 = vrcp.f32 %v2089_v52  ;;  %v3511_v52 = vld [vmem:[%s4394_s6 + $0x18] sm:$0xff]  }
0x1905   :  { %v2145_v54 = vpop.permute.xlu0 %2144 }
0x1906   :  { %v2150_v55 = vsel %vm337_vm3, %v2145_v54, 0 }
0x1907   :  { %3378 = vmatpush3.bf16.msra.mxu1 %v2150_v55 }
0x1908   :  { %v3591_v42 = vpop.eup %3590  ;;  %3389 = vmatprep.subr.bf16.mxu1 %v3642_v15 }
0x1909   :  { %v2092_v32 = vmul.f32 %v3591_v42, %v3587_v51  ;;  %v2243_v60 = vpop.permute.xlu0 %2242 }
0x190b   :  { %v2094_v56 = vpack.c.bf16 %v2092_v32, %v2092_v32 }
0x190c   :  { %v3593_v23 = vpop.eup %3592 }
0x190d   :  { %v2093_v28 = vmul.f32 %v3593_v23, %v3589_v47  ;;  %3374 = vmatmul.mubr.msk.bf16.vlgmr.msra.gmra.mrb[64].mxu0 %vm212_vm2, %v2094_v56 }
0x190e   :  { %3384 = vmatpush3.bf16.xpose.msra.mxu0 %v2200_v27  ;;  %3385 = vmatprep.mubr.msk.bf16.mxu0 %vm3643_vm1, %v3642_v15 }
0x190f   :  { %v2095_v57 = vpack.c.bf16 %v2093_v28, %v2093_v28  ;;  %3395 = vmatprep.subr.bf16.mxu0 %v3642_v15 }
0x1911   :  { %3380 = vmatmul.mubr.msk.bf16.vlgmr.msra.gmra.mrb[60].mxu1 %vm212_vm2, %v2095_v57 }
0x1912   :  { %3390 = vmatpush3.bf16.xpose.msra.mxu1 %v2250_v58  ;;  %3391 = vmatprep.mubr.msk.bf16.mxu1 %vm3643_vm1, %v3642_v15 }
0x1913   :  { %3401 = vmatprep.subr.bf16.mxu1 %v3642_v15 }
0x1915   :  { %3386 = vmatmul.mubr.msk.bf16.vlgmr.msra.gmra.mrb[68].mxu0 %vm212_vm2, %v2193_v59 }
0x1916   :  { %3397 = vmatprep.mubr.msk.bf16.mxu0 %vm3643_vm1, %v3642_v15 }
0x1919   :  { %3392 = vmatmul.mubr.msk.bf16.vlgmr.msra.gmra.mrb[64].mxu1 %vm212_vm2, %v2243_v60 }
0x191a   :  { %3403 = vmatprep.mubr.msk.bf16.mxu1 %vm3643_vm1, %v3642_v15 }
0x19e0   :  { %v2138_v61 = vpop.f32.mrb[64].mxu0 }
0x19e1   :  { %v3375_v62 = vpop.f32.mrb[65].mxu0 }
0x19e2   :  { %v2141_v63 = vpop.f32.mrb[66].mxu0 }
0x19e3   :  { %v3376_v0 = vpop.f32.mrb[67].mxu0 }
0x19e4   :  { %v2186_v50 = vpop.f32.mrb[60].mxu1 }
0x19e5   :  { %v3488_v39 = vpack.i.bf16 %v2186_v50, %v2138_v61  ;;  %v3381_v2 = vpop.f32.mrb[61].mxu1 }
0x19e6   :  { %v2189_v3 = vpop.f32.mrb[62].mxu1 }
0x19e7   :  { %v3382_v4 = vpop.f32.mrb[63].mxu1 }
0x19e8   :  { %v2236_v7 = vpop.f32.mrb[68].mxu0 }
0x19e9   :  { %v2237_v11 = vadd.f32 %v4117_v34, %v2236_v7  ;;  %v3387_v49 = vpop.f32.mrb[69].mxu0 }
0x19ea   :  { %v2239_v13 = vpop.f32.mrb[70].mxu0 }
0x19eb   :  { %v3388_v14 = vpop.f32.mrb[71].mxu0  ;;  %v2292_v16 = vsel %vm212_vm2, %v2237_v11, -inf }
0x19ec   :  { %v2286_v18 = vpop.f32.mrb[64].mxu1  ;;  %2293 = vmax.xlane.f32.xlu1 %v2292_v16 }
0x19ed   :  { %v2287_v19 = vadd.f32 %v4123_v41, %v2286_v18  ;;  %v3393_v21 = vpop.f32.mrb[65].mxu1 }
0x19ee   :  { %v2289_v22 = vpop.f32.mrb[66].mxu1 }
0x19ef   :  { %v3394_v24 = vpop.f32.mrb[67].mxu1  ;;  %v2295_v25 = vsel %vm212_vm2, %v2287_v19, -inf }
0x19f0   :  { %2296 = vmax.xlane.f32.xlu0 %v2295_v25 }
0x19fd   :  { %2316 = vrot.lane.b32.xlu1 %v4090_v17, %s4442_s25 }
0x1a01   :  { %3484 = vrot.lane.b32.xlu1 %v3483_v6, %s4443_s22 }
0x1a05   :  { %3489 = vrot.lane.b32.xlu1 %v3488_v39, %s4444_s23 }
0x1a79   :  { %v2294_v34 = vpop.xlane.xlu1 %2293 }
0x1a7a   :  { %v2298_v26 = vsub.f32 %v2237_v11, %v2294_v34 }
0x1a7c   :  { %v2300_v29 = vmul.f32 1.442695, %v2298_v26 }
0x1a7d   :  { %v2297_v41 = vpop.xlane.xlu0 %2296  ;;  %v2317_v35 = vpop.permute.xlu1 %2316 }
0x1a7e   :  { %3594 = vpow2.f32 %v2300_v29  ;;  %v2299_v36 = vsub.f32 %v2287_v19, %v2297_v41  ;;  %v2322_v37 = vsel %vm337_vm3, %v2317_v35, 0 }
0x1a7f   :  { %3396 = vmatpush3.bf16.msra.mxu0 %v2322_v37 }
0x1a80   :  { %v2302_v38 = vmul.f32 1.442695, %v2299_v36  ;;  %3407 = vmatprep.subr.bf16.mxu0 %v3642_v15 }
0x1a81   :  { %v3485_v30 = vpop.permute.xlu1 %3484 }
0x1a82   :  { %3596 = vpow2.f32 %v2302_v38  ;;  %v3487_v58 = vunpack.i.h.bf16 %v3485_v30  ;;  %v3486_v59 = vunpack.i.l.bf16 %v3485_v30 }
0x1a84   :  { %v2437_v63 = vsel %vm212_vm2, %v4164_v12, %v3487_v58  ;;  %v2436_v0 = vsel %vm212_vm2, %v4162_v8, %v3486_v59  ;;  %v3021_v8 = vld [vmem:[%s4395_s7 + $0x1] ss:$0 sm:$0xff] }
0x1a85   :  { %v3490_v57 = vpop.permute.xlu1 %3489 }
0x1a86   :  { %v3492_v60 = vunpack.i.h.bf16 %v3490_v57  ;;  %v3491_v61 = vunpack.i.l.bf16 %v3490_v57 }
0x1a88   :  { %v3595_v17 = vpop.eup %3594  ;;  %v2438_v2 = vsel %vm1115_vm4, %v2436_v0, %v3491_v61  ;;  %v2439_v3 = vsel %vm1115_vm4, %v2437_v63, %v3492_v60 }
0x1a89   :  { %v2304_v1 = vsel %vm212_vm2, %v3595_v17, 0.0 }
0x1a8a   :  { %2305 = vadd.xlane.f32.xlu0 %v2304_v1 }
0x1a8c   :  { %v3597_v5 = vpop.eup %3596 }
0x1a8d   :  { %v2307_v6 = vsel %vm212_vm2, %v3597_v5, 0.0 }
0x1a8e   :  { %2308 = vadd.xlane.f32.xlu0 %v2307_v6 }
0x1aa4   :  { %2364 = vrot.lane.b32.xlu0 %v4092_v20, %s4442_s25 }
0x1b17   :  { %v2306_v40 = vpop.xlane.xlu0 %2305 }
0x1b18   :  { %3598 = vrcp.f32 %v2306_v40 }
0x1b1b   :  { %v2309_v43 = vpop.xlane.xlu0 %2308 }
0x1b1c   :  { %3600 = vrcp.f32 %v2309_v43 }
0x1b1f   :  { %v2365_v44 = vpop.permute.xlu0 %2364 }
0x1b20   :  { %v2370_v45 = vsel %vm337_vm3, %v2365_v44, 0 }
0x1b21   :  { %3402 = vmatpush3.bf16.msra.mxu1 %v2370_v45 }
0x1b22   :  { %v3599_v46 = vpop.eup %3598  ;;  %3415 = vmatprep.subr.bf16.mxu1 %v3642_v15 }
0x1b23   :  { %v2312_v51 = vmul.f32 %v3599_v46, %v3595_v17  ;;  %v3513_v17 = vld [vmem:[%s4398_s10 + $0x18] sm:$0xff]  }
0x1b25   :  { %v2314_v53 = vpack.c.bf16 %v2312_v51, %v2312_v51  ;;  %v3027_v51 = vld [vmem:[%s4396_s8 + $0x1] ss:$0 sm:$0xff] }
0x1b26   :  { %v3601_v47 = vpop.eup %3600 }
0x1b27   :  { %v2313_v33 = vmul.f32 %v3601_v47, %v3597_v5  ;;  %3398 = vmatmul.mubr.msk.bf16.vlgmr.msra.gmra.mrb[72].mxu0 %vm212_vm2, %v2314_v53 }
0x1b28   :  { %3411 = vmatprep.mubr.msk.bf16.mxu0 %vm3643_vm1, %v3642_v15  ;;  %3408 = vmatpush3.bf16.msra.mxu0 %v3510_v48 }
0x1b29   :  { %v2315_v20 = vpack.c.bf16 %v2313_v33, %v2313_v33  ;;  %3409 = vmatprep.subr.bf16.mxu0 %v3642_v15 }
0x1b2b   :  { %3404 = vmatmul.mubr.msk.bf16.vlgmr.msra.gmra.mrb[68].mxu1 %vm212_vm2, %v2315_v20  ;;  %v3028_v20 = vld [vmem:[%s4397_s9 + $0x1] ss:$0 sm:$0xff] }
0x1b2c   :  { %3419 = vmatprep.mubr.msk.bf16.mxu1 %vm3643_vm1, %v3642_v15  ;;  %3410 = vmatpush3.bf16.msra.mxu0 %v3511_v52 }
0x1b2d   :  { %3423 = vmatprep.subr.bf16.mxu0 %v3642_v15 }
0x1bfa   :  { %v2358_v54 = vpop.f32.mrb[72].mxu0 }
0x1bfb   :  { %v3399_v55 = vpop.f32.mrb[73].mxu0 }
0x1bfc   :  { %v2361_v42 = vpop.f32.mrb[74].mxu0 }
0x1bfd   :  { %v3400_v31 = vpop.f32.mrb[75].mxu0  ;;  %v3514_v42 = vld [vmem:[%s4400_s12 + $0x20] sm:$0xff]  }
0x1bfe   :  { %v2406_v32 = vpop.f32.mrb[68].mxu1  ;;  %v3515_v31 = vld [vmem:[%s4400_s12 + $0x28] sm:$0xff]  }
0x1bff   :  { %v3493_v56 = vpack.i.bf16 %v2406_v32, %v2358_v54  ;;  %v3405_v23 = vpop.f32.mrb[69].mxu1  ;;  %v3516_v32 = vld [vmem:[%s4400_s12 + $0x30] sm:$0xff]  }
0x1c00   :  { %v2409_v27 = vpop.f32.mrb[70].mxu1  ;;  %v3034_v23 = vld [vmem:[%s4399_s11 + $0x1] ss:$0 sm:$0xff] }
0x1c01   :  { %v3406_v28 = vpop.f32.mrb[71].mxu1  ;;  %3494 = vrot.lane.b32.xlu1 %v3493_v56, %s4445_s5  ;;  %v3517_v56 = vld [vmem:[%s4400_s12 + $0x38] sm:$0xff]  }
0x1c73   :  { %v3495_v62 = vpop.permute.xlu1 %3494 }
0x1c74   :  { %v3497_v50 = vunpack.i.h.bf16 %v3495_v62  ;;  %v3496_v39 = vunpack.i.l.bf16 %v3495_v62 }
0x1c76   :  { %v2441_v4 = vsel %vm1118_vm5, %v2439_v3, %v3497_v50  ;;  %v2440_v7 = vsel %vm1118_vm5, %v2438_v2, %v3496_v39 }
0x1c77   :  { %v2447_v11 = vpack.c.bf16 %v2441_v4, %v2440_v7 }
0x1c79   :  { %3412 = vmatmul.mubr.msk.bf16.vlgmr.msra.gmra.mrb[76].mxu0 %vm73_vm0, %v2447_v11 }
0x1c7a   :  { %3431 = vmatprep.mubr.msk.bf16.mxu0 %vm3643_vm1, %v3642_v15  ;;  %3424 = vmatpush3.bf16.msra.mxu0 %v3514_v42  ;;  %v3056_v42 = vld [vmem:[%s4403_s15 + $0x1] ss:$0 sm:$0xff] }
0x1c7b   :  { %3425 = vmatprep.subr.bf16.mxu0 %v3642_v15 }
0x1c7e   :  { %3426 = vmatpush3.bf16.msra.mxu0 %v3515_v31 }
0x1c7f   :  { %3427 = vmatprep.subr.bf16.mxu0 %v3642_v15 }
0x1c82   :  { %3428 = vmatpush3.bf16.msra.mxu0 %v3516_v32 }
0x1c83   :  { %3429 = vmatprep.subr.bf16.mxu0 %v3642_v15 }
0x1c86   :  { %3430 = vmatpush3.bf16.msra.mxu0 %v3517_v56 }
0x1d4c   :  { %v2505_v12 = vpop.f32.mrb[76].mxu0 }
0x1d4d   :  { %v2506_v49 = vadd.f32 %v3021_v8, %v2505_v12  ;;  %v3413_v13 = vpop.f32.mrb[77].mxu0 }
0x1d4e   :  { %v2508_v14 = vpop.f32.mrb[78].mxu0 }
0x1d4f   :  { %v2509_v16 = vadd.f32 %v3021_v8, %v2508_v14  ;;  %v3414_v18 = vpop.f32.mrb[79].mxu0  ;;  %v2512_v19 = vadd.f32 %v2506_v49, %v4078_v9 }
0x1d51   :  { %v2518_v21 = vsel %vm73_vm0, %v2512_v19, 0.0  ;;  %v2513_v22 = vadd.f32 %v2509_v16, %v4080_v10  ;;  %v3512_v10 = vld [vmem:[%s4398_s10 + $0x10] sm:$0xff]  }
0x1d52   :  { %2519 = vadd.xlane.f32.xlu0 %v2518_v21  ;;  %3416 = vmatpush3.bf16.msra.mxu1 %v3512_v10 }
0x1d53   :  { %v2521_v24 = vsel %vm73_vm0, %v2513_v22, 0.0  ;;  %3417 = vmatprep.subr.bf16.mxu1 %v3642_v15 }
0x1d54   :  { %2522 = vadd.xlane.f32.xlu1 %v2521_v24 }
0x1d56   :  { %3418 = vmatpush3.bf16.msra.mxu1 %v3513_v17 }
0x1d57   :  { %3435 = vmatprep.subr.bf16.mxu1 %v3642_v15 }
0x1ddf   :  { %v2520_v25 = vpop.xlane.xlu0 %2519 }
0x1de0   :  { %v2524_v34 = vmul.f32 0.03125, %v2520_v25 }
0x1de1   :  { %v2523_v26 = vpop.xlane.xlu1 %2522 }
0x1de2   :  { %v2526_v29 = vsub.f32 %v2512_v19, %v2524_v34  ;;  %v2525_v41 = vmul.f32 0.03125, %v2523_v26  ;;  %v3047_v19 = vld [vmem:[%s4401_s13 + $0x1] ss:$0 sm:$0xff] }
0x1de4   :  { %v2527_v35 = vsub.f32 %v2513_v22, %v2525_v41  ;;  %v2528_v36 = vmul.f32 %v2526_v29, %v2526_v29 }
0x1de6   :  { %v2530_v37 = vsel %vm73_vm0, %v2528_v36, 0.0  ;;  %v2529_v38 = vmul.f32 %v2527_v35, %v2527_v35 }
0x1de7   :  { %2531 = vadd.xlane.f32.xlu0 %v2530_v37 }
0x1de8   :  { %v2533_v9 = vsel %vm73_vm0, %v2529_v38, 0.0 }
0x1deb   :  { %2534 = vadd.xlane.f32.xlu0 %v2533_v9 }
0x1e74   :  { %v2532_v1 = vpop.xlane.xlu0 %2531 }
0x1e75   :  { %v2536_v5 = vmul.f32 0.03125, %v2532_v1 }
0x1e77   :  { %v2538_v6 = vadd.f32 1e-12, %v2536_v5 }
0x1e78   :  { %v2535_v40 = vpop.xlane.xlu0 %2534 }
0x1e79   :  { %3602 = vrsqrt.f32 %v2538_v6  ;;  %v2537_v43 = vmul.f32 0.03125, %v2535_v40 }
0x1e7b   :  { %v2539_v44 = vadd.f32 1e-12, %v2537_v43 }
0x1e7d   :  { %3604 = vrsqrt.f32 %v2539_v44  ;;  %v3518_v44 = vld [vmem:[%s4404_s16] sm:$0xff]  }
0x1e83   :  { %v3603_v45 = vpop.eup %3602 }
0x1e84   :  { %v2542_v46 = vmul.f32 %v3603_v45, %v2526_v29  ;;  %v3519_v45 = vld [vmem:[%s4404_s16 + $0x8] sm:$0xff]  }
0x1e86   :  { %v2550_v47 = vmul.f32 %v3027_v51, %v2542_v46 }
0x1e87   :  { %v3605_v53 = vpop.eup %3604 }
0x1e88   :  { %v2543_v33 = vmul.f32 %v3605_v53, %v2527_v35  ;;  %v2558_v52 = vadd.f32 %v3028_v20, %v2550_v47 }
0x1e8a   :  { %v2551_v48 = vmul.f32 %v3027_v51, %v2543_v33 }
0x1e8c   :  { %v2559_v54 = vadd.f32 %v3028_v20, %v2551_v48 }
0x1e8e   :  { %v2565_v55 = vpack.c.bf16 %v2559_v54, %v2558_v52 }
0x1e90   :  { %3420 = vmatmul.mubr.msk.bf16.vlgmr.msra.gmra.mrb[72].mxu1 %vm73_vm0, %v2565_v55 }
0x1e91   :  { %3439 = vmatprep.mubr.msk.bf16.mxu1 %vm3643_vm1, %v3642_v15  ;;  %3436 = vmatpush3.bf16.msra.mxu1 %v3518_v44 }
0x1e92   :  { %3437 = vmatprep.subr.bf16.mxu1 %v3642_v15 }
0x1e95   :  { %3438 = vmatpush3.bf16.msra.mxu1 %v3519_v45 }
0x1e96   :  { %3443 = vmatprep.subr.bf16.mxu1 %v3642_v15 }
0x1f63   :  { %v2623_v27 = vpop.f32.mrb[72].mxu1 }
0x1f64   :  { %v2624_v28 = vadd.f32 %v3034_v23, %v2623_v27  ;;  %v3421_v30 = vpop.f32.mrb[73].mxu1 }
0x1f65   :  { %v2626_v57 = vpop.f32.mrb[74].mxu1 }
0x1f66   :  { %v2632_v58 = vmul.f32 0.044715, %v2624_v28  ;;  %v2627_v59 = vadd.f32 %v3034_v23, %v2626_v57  ;;  %v3422_v60 = vpop.f32.mrb[75].mxu1  ;;  %v2630_v12 = vmul.f32 0.5, %v2624_v28 }
0x1f68   :  { %v2634_v61 = vmul.f32 %v2632_v58, %v2624_v28  ;;  %v2633_v62 = vmul.f32 0.044715, %v2627_v59  ;;  %v2631_v49 = vmul.f32 0.5, %v2627_v59 }
0x1f6a   :  { %v2636_v63 = vmul.f32 %v2634_v61, %v2624_v28  ;;  %v2635_v0 = vmul.f32 %v2633_v62, %v2627_v59  ;;  %v3520_v62 = vld [vmem:[%s4406_s18] sm:$0xff]  }
0x1f6c   :  { %v2638_v50 = vadd.f32 %v2636_v63, %v2624_v28  ;;  %v2637_v39 = vmul.f32 %v2635_v0, %v2627_v59  ;;  %v3521_v63 = vld [vmem:[%s4406_s18 + $0x8] sm:$0xff]   ;;  %v3057_v0 = vld [vmem:[%s4405_s17] ss:$0 sm:$0xff]  ;;  %s3658_s18 = smov [#allocation2]  }
0x1f6d   :  { %s2933_s25 = sshll.u32 %s3658_s18, 4  ;;  %s2934_s25 = int_to_ptr.vmem [resolvable:$true] %s2933_s25 }
0x1f6e   :  { %v2640_v2 = vmul.f32 0.7978846, %v2638_v50  ;;  %v2639_v3 = vadd.f32 %v2637_v39, %v2627_v59  ;;  %s3618_s17 = scalar_lea.vmem %s2934_s25, 32  ;;  %p3623_p1 = scmp.lt.s32.totalorder %s2934_s25, %s2934_s25 }
0x1f6f   :  { %p3619_p0 = scmp.ne.s32.totalorder %s2934_s25, %s3618_s17  ;;  %p3624_p2 = scmp.lt.s32.totalorder %s3618_s17, %s3618_s17 }
0x1f70   :  { %3606 = vtanh.f32 %v2640_v2  ;;  %v2641_v4 = vmul.f32 0.7978846, %v2639_v3 }
0x1f71   :  { %p3625_p3 = por %p3624_p2, %p3623_p1 }
0x1f72   :  { %3608 = vtanh.f32 %v2641_v4 }
0x1f73   :  { %p3626_p4 = pnand %p3625_p3, %p3619_p0 }
0x1f7a   :  { %v3607_v7 = vpop.eup %3606 }
0x1f7b   :  { %v2644_v11 = vadd.f32 1.0, %v3607_v7 }
0x1f7c   :  { %v3609_v8 = vpop.eup %3608 }
0x1f7d   :  { %v2645_v13 = vadd.f32 1.0, %v3609_v8  ;;  %v2646_v14 = vmul.f32 %v2644_v11, %v2630_v12 }
0x1f7f   :  { %v2647_v16 = vmul.f32 %v2645_v13, %v2631_v49 }
0x1f81   :  { %v2657_v18 = vpack.c.bf16 %v2647_v16, %v2646_v14 }
0x1f83   :  { %3432 = vmatmul.mubr.msk.bf16.vlgmr.msra.gmra.mrb[80].mxu0 %vm1361_vm6, %v2657_v18 }
0x2056   :  { %v2727_v21 = vpop.f32.mrb[80].mxu0 }
0x2057   :  { %v2728_v22 = vadd.f32 %v3047_v19, %v2727_v21  ;;  %v3433_v24 = vpop.f32.mrb[81].mxu0 }
0x2058   :  { %v2730_v25 = vpop.f32.mrb[82].mxu0 }
0x2059   :  { %v2734_v34 = vadd.f32 %v2728_v22, %v2558_v52  ;;  %v2731_v26 = vadd.f32 %v3047_v19, %v2730_v25  ;;  %v3434_v29 = vpop.f32.mrb[83].mxu0  ;;  %v3055_v52 = vld [vmem:[%s4402_s14 + $0x1] ss:$0 sm:$0xff] }
0x205b   :  { %v2735_v41 = vadd.f32 %v2731_v26, %v2559_v54  ;;  %v2740_v35 = vsel %vm73_vm0, %v2734_v34, 0.0 }
0x205c   :  { %2741 = vadd.xlane.f32.xlu1 %v2740_v35 }
0x205d   :  { %v2743_v36 = vsel %vm73_vm0, %v2735_v41, 0.0 }
0x205e   :  { %2744 = vadd.xlane.f32.xlu0 %v2743_v36 }
0x20e9   :  { %v2742_v37 = vpop.xlane.xlu1 %2741 }
0x20ea   :  { %v2746_v38 = vmul.f32 0.03125, %v2742_v37 }
0x20eb   :  { %v2745_v9 = vpop.xlane.xlu0 %2744 }
0x20ec   :  { %v2748_v10 = vsub.f32 %v2734_v34, %v2746_v38  ;;  %v2747_v17 = vmul.f32 0.03125, %v2745_v9 }
0x20ee   :  { %v2749_v1 = vsub.f32 %v2735_v41, %v2747_v17  ;;  %v2750_v5 = vmul.f32 %v2748_v10, %v2748_v10 }
0x20f0   :  { %v2752_v6 = vsel %vm73_vm0, %v2750_v5, 0.0  ;;  %v2751_v40 = vmul.f32 %v2749_v1, %v2749_v1 }
0x20f1   :  { %2753 = vadd.xlane.f32.xlu1 %v2752_v6 }
0x20f2   :  { %v2755_v43 = vsel %vm73_vm0, %v2751_v40, 0.0 }
0x20f3   :  { %2756 = vadd.xlane.f32.xlu0 %v2755_v43 }
0x217e   :  { %v2754_v46 = vpop.xlane.xlu1 %2753 }
0x217f   :  { %v2758_v51 = vmul.f32 0.03125, %v2754_v46 }
0x2180   :  { %v2757_v53 = vpop.xlane.xlu0 %2756 }
0x2181   :  { %v2760_v47 = vadd.f32 1e-12, %v2758_v51  ;;  %v2759_v33 = vmul.f32 0.03125, %v2757_v53 }
0x2183   :  { %3610 = vrsqrt.f32 %v2760_v47  ;;  %v2761_v20 = vadd.f32 1e-12, %v2759_v33 }
0x2185   :  { %3612 = vrsqrt.f32 %v2761_v20 }
0x218d   :  { %v3611_v48 = vpop.eup %3610 }
0x218e   :  { %v2764_v54 = vmul.f32 %v3611_v48, %v2748_v10 }
0x218f   :  { %v3613_v55 = vpop.eup %3612 }
0x2190   :  { %v2772_v31 = vmul.f32 %v3055_v52, %v2764_v54  ;;  %v2765_v32 = vmul.f32 %v3613_v55, %v2749_v1 }
0x2192   :  { %v2780_v56 = vadd.f32 %v3056_v42, %v2772_v31  ;;  %v2773_v23 = vmul.f32 %v3055_v52, %v2765_v32 }
0x2194   :  { %v2781_v27 = vadd.f32 %v3056_v42, %v2773_v23  ;;  %v2786_v28 = vpack.c.bf16 %v2780_v56, %v2780_v56 }
0x2196   :  { %v2787_v30 = vpack.c.bf16 %v2781_v27, %v2781_v27  ;;  %v2797_v58 = vunpack.c.l.b16 %v2786_v28 }
0x2198   :  { %v2798_v57 = vunpack.c.l.b16 %v2787_v30 }
0x219a   :  { %v2799_v59 = vrot.slane %v2798_v57, 7 }
0x219c   :  { %v2801_v60 = vsel %vm2800_vm7, %v2799_v59, %v2797_v58 }
0x219d   :  { %v2802_v61 = vpack.c.b16 %v2801_v60, %v2801_v60 }
0x219f   :  { %3440 = vmatmul.mubr.msk.bf16.vlgmr.msra.gmra.mrb[76].mxu1 %vm73_vm0, %v2802_v61 }
0x21a0   :  { %3447 = vmatprep.mubr.msk.bf16.mxu1 %vm3643_vm1, %v3642_v15  ;;  %3444 = vmatpush3.bf16.msra.mxu1 %v3520_v62 }
0x21a1   :  { %3445 = vmatprep.subr.bf16.mxu1 %v3642_v15  ;;  %v3061_v15 = vld [vmem:[%s4407_s19] ss:$0 sm:$0xff] }
0x21a4   :  { %3446 = vmatpush3.bf16.msra.mxu1 %v3521_v63 }
0x2272   :  { %v2852_v50 = vpop.f32.mrb[76].mxu1 }
0x2273   :  { %v2853_v39 = vadd.f32 %v3057_v0, %v2852_v50  ;;  %v3441_v2 = vpop.f32.mrb[77].mxu1 }
0x2274   :  { %v2855_v3 = vpop.f32.mrb[78].mxu1 }
0x2275   :  { %3614 = vtanh.f32 %v2853_v39  ;;  %v3442_v4 = vpop.f32.mrb[79].mxu1 }
0x227f   :  { %v3615_v7 = vpop.eup %3614 }
0x2280   :  { %v2863_v11 = vpack.c.bf16 %v3615_v7, %v3615_v7 }
0x2282   :  { %3448 = vmatmul.mubr.msk.bf16.vlgmr.msra.gmra.mrb[80].mxu1 %vm73_vm0, %v2863_v11 }
0x2355   :  { %v2920_v8 = vpop.f32.mrb[80].mxu1 }
0x2356   :  { %v2921_v12 = vadd.f32 %v3061_v15, %v2920_v8  ;;  %v3449_v49 = vpop.f32.mrb[81].mxu1 }
0x2357   :  { %v2923_v13 = vpop.f32.mrb[82].mxu1 }
0x2358   :  { %2926 = vst [vmem:[#allocation2] sm:$0x3] %v2921_v12  ;;  %v3450_v14 = vpop.f32.mrb[83].mxu1 }
0x2359   :  { %3629 = shalt.err (!%p3626_p4)
}
0x235a   :  { %s3630_s19 = scalar_lea.hbm %s4408_s20, 32 }
0x235b   :  { %p3631_p5 = scmp.ne.s32.totalorder %s4408_s20, %s3630_s19  ;;  %p3634_p6 = scmp.lt.u32.totalorder %s3630_s19, %s4408_s20 }
0x235d   :  { %p3636_p7 = pnand %p3634_p6, %p3631_p5 }
0x235f   :  { %3639 = shalt.err (!%p3636_p7)
}
0x2360   :  { %2936 = dma.vmem_to_hbm [thread:$0]  %s2934_s25, 32, %s4408_s20, [#allocation3]  }
0x2361   :  { %3640 = dma.done.wait [#allocation3], 32  }
0x2362   :  { %3641 = vsyncadd [#allocation3], 4294967264 }
0x2363   :  { %2940 = vsyncpa [#allocation3], 1 }

</bundles_post_ra>
